<compile_context>
chip_gen: v6e
topology: v6e:2x2x1
jax: 0.10.0
libtpu: 0.0.40
codegen_flags: <defaults>
</compile_context>

<pallas_src>
import numpy as np
import jax
import jax.numpy as jnp
from jax import lax
from jax.experimental import pallas as pl
from jax.experimental.pallas import tpu as pltpu

LANE = 128
SUBLANE = 8


def _round_up(x, m):
    return (x + m - 1) // m * m


# ----------------------------- Pallas kernel ------------------------------- #
def decoder_kernel(x_ref, wl_ref, bl_ref, m1_ref, b1_ref, m2_ref, b2_ref,
                   m3_ref, b3_ref, out_ref):
    wdt = wl_ref.dtype  # weight dtype (f32 or bf16); accumulation is always f32

    # Linear(lat_size, 8*4*4) + ReLU                               -> (tb, 128)
    h = jnp.dot(x_ref[...].astype(wdt), wl_ref[...],
                preferred_element_type=jnp.float32) + bl_ref[...]
    h = jnp.maximum(h, 0.0)
    # ConvTranspose2d(8, 4, 3, s=2, p=1) + ReLU        -> (tb, 256) [196 real]
    h = jnp.dot(h.astype(wdt), m1_ref[...],
                preferred_element_type=jnp.float32) + b1_ref[...]
    h = jnp.maximum(h, 0.0)
    # ConvTranspose2d(4, 2, 3, s=2, p=1) + ReLU        -> (tb, 384) [338 real]
    h = jnp.dot(h.astype(wdt), m2_ref[...],
                preferred_element_type=jnp.float32) + b2_ref[...]
    h = jnp.maximum(h, 0.0)
    # ConvTranspose2d(2, nc, 6, s=2, p=1) + Sigmoid    -> (tb, 896) [784 real]
    h = jnp.dot(h.astype(wdt), m3_ref[...],
                preferred_element_type=jnp.float32) + b3_ref[...]
    out_ref[...] = jax.nn.sigmoid(h)


# ------------------------- parameter construction -------------------------- #
def convtranspose_as_matrix(weight, bias, in_hw, stride, padding):
    """Exact dense-matrix form of a ConvTranspose2d.

    weight: (C_in, C_out, kH, kW) numpy array (PyTorch layout).
    Returns (M, b_row, (H_out, W_out)) with
        out_flat[b, :] = in_flat[b, :] @ M + b_row
    where flat index = (c * H + h) * W + w (row-major NCHW flatten).
    """
    C_in, C_out, kH, kW = weight.shape
    H_in, W_in = in_hw
    H_out = (H_in - 1) * stride - 2 * padding + kH
    W_out = (W_in - 1) * stride - 2 * padding + kW
    M = np.zeros((C_in * H_in * W_in, C_out * H_out * W_out), dtype=np.float32)
    for ci in range(C_in):
        for ih in range(H_in):
            for iw in range(W_in):
                row = (ci * H_in + ih) * W_in + iw
                for co in range(C_out):
                    for kh in range(kH):
                        oh = ih * stride - padding + kh
                        if not (0 <= oh < H_out):
                            continue
                        for kw in range(kW):
                            ow = iw * stride - padding + kw
                            if not (0 <= ow < W_out):
                                continue
                            col = (co * H_out + oh) * W_out + ow
                            M[row, col] += weight[ci, co, kh, kw]
    b_row = np.repeat(np.asarray(bias, np.float32), H_out * W_out)
    return M, b_row, (H_out, W_out)


def init_raw_params(key, n_channels, lat_size):
    """Deterministic init mirroring the module's __init__ shapes."""
    ks = jax.random.split(key, 8)

    def u(k, shape, fan_in):
        bound = 1.0 / np.sqrt(fan_in)
        return jax.random.uniform(k, shape, jnp.float32, -bound, bound)

    w_lin = u(ks[0], (8 * 4 * 4, lat_size), lat_size)   # Linear weight (out, in)
    b_lin = u(ks[1], (8 * 4 * 4,), lat_size)
    w1 = u(ks[2], (8, 4, 3, 3), 4 * 3 * 3)              # ConvT weight (C_in, C_out, k, k)
    b1 = u(ks[3], (4,), 4 * 3 * 3)
    w2 = u(ks[4], (4, 2, 3, 3), 2 * 3 * 3)
    b2 = u(ks[5], (2,), 2 * 3 * 3)
    w3 = u(ks[6], (2, n_channels, 6, 6), n_channels * 6 * 6)
    b3 = u(ks[7], (n_channels,), n_channels * 6 * 6)
    return dict(w_lin=w_lin, b_lin=b_lin, w1=w1, b1=b1,
                w2=w2, b2=b2, w3=w3, b3=b3)


def pack_params(raw, n_channels, weight_dtype=jnp.float32):
    """Glue: scatter-matrix form of the conv transposes, zero-padded to lane
    multiples so every intermediate and the output are lane-dense."""
    m1, bb1, hw1 = convtranspose_as_matrix(
        np.asarray(raw["w1"]), np.asarray(raw["b1"]), (4, 4), stride=2, padding=1)
    m2, bb2, hw2 = convtranspose_as_matrix(
        np.asarray(raw["w2"]), np.asarray(raw["b2"]), hw1, stride=2, padding=1)
    m3, bb3, hw3 = convtranspose_as_matrix(
        np.asarray(raw["w3"]), np.asarray(raw["b3"]), hw2, stride=2, padding=1)

    n0 = 8 * 4 * 4                                  # 128, already lane-aligned
    n1p = _round_up(m1.shape[1], LANE)              # 196 -> 256
    n2p = _round_up(m2.shape[1], LANE)              # 338 -> 384
    n3p = _round_up(m3.shape[1], LANE)              # 784 -> 896

    def pad2(a, r, c):
        out = np.zeros((r, c), np.float32)
        out[:a.shape[0], :a.shape[1]] = a
        return out

    def pad1(v, c):
        out = np.zeros((1, c), np.float32)
        out[0, :v.shape[0]] = v
        return out

    packed = dict(
        wl=jnp.asarray(np.asarray(raw["w_lin"]).T, dtype=weight_dtype),   # (lat, 128)
        bl=jnp.asarray(np.asarray(raw["b_lin"])[None, :], jnp.float32),   # (1, 128)
        m1=jnp.asarray(pad2(m1, n0, n1p), dtype=weight_dtype),            # (128, 256)
        b1=jnp.asarray(pad1(bb1, n1p), jnp.float32),
        m2=jnp.asarray(pad2(m2, n1p, n2p), dtype=weight_dtype),           # (256, 384)
        b2=jnp.asarray(pad1(bb2, n2p), jnp.float32),
        m3=jnp.asarray(pad2(m3, n2p, n3p), dtype=weight_dtype),           # (384, 896)
        b3=jnp.asarray(pad1(bb3, n3p), jnp.float32),
    )
    meta = dict(n_out=m3.shape[1], out_hw=hw3)
    return packed, meta


# ------------------------------ wrapper ------------------------------------ #
def decoder_forward(x, packed, n_channels, meta, max_batch_tile=128):
    B, lat = x.shape
    n3p = packed["m3"].shape[1]

    # Batch tiling: fill MXU sublanes.  Large batches are tiled at 128 rows and
    # sharded across TensorCores ("parallel"); small batches are only rounded
    # up to the sublane multiple (padding 2 -> 128 would be wasted flops).
    if B <= max_batch_tile:
        tile_b = _round_up(B, SUBLANE)
        B_pad = tile_b
    else:
        tile_b = max_batch_tile
        B_pad = _round_up(B, tile_b)
    x_pad = jnp.pad(x, ((0, B_pad - B), (0, 0))) if B_pad != B else x
    grid = (B_pad // tile_b,)

    def const_spec(shape):
        # Whole-array VMEM residency; constant block index -> fetched once,
        # reused across all batch tiles.
        return pl.BlockSpec(shape, lambda i: (0, 0))

    in_specs = [
        pl.BlockSpec((tile_b, lat), lambda i: (i, 0)),
        const_spec(packed["wl"].shape), const_spec(packed["bl"].shape),
        const_spec(packed["m1"].shape), const_spec(packed["b1"].shape),
        const_spec(packed["m2"].shape), const_spec(packed["b2"].shape),
        const_spec(packed["m3"].shape), const_spec(packed["b3"].shape),
    ]
    out_specs = pl.BlockSpec((tile_b, n3p), lambda i: (i, 0))

    # Advisory cost estimate so XLA can overlap the weight DMA with neighbors.
    k0, n0 = packed["wl"].shape
    n1 = packed["m1"].shape[1]
    n2 = packed["m2"].shape[1]
    n3 = packed["m3"].shape[1]
    flops = 2 * B_pad * (k0 * n0 + n0 * n1 + n1 * n2 + n2 * n3)
    bytes_accessed = int(
        x_pad.size * x_pad.dtype.itemsize
        + sum(int(np.prod(v.shape)) * v.dtype.itemsize for v in packed.values())
        + B_pad * n3 * 4)
    cost = pl.CostEstimate(flops=flops, transcendentals=B_pad * n3,
                           bytes_accessed=bytes_accessed)

    out_flat = pl.pallas_call(
        decoder_kernel,
        out_shape=jax.ShapeDtypeStruct((B_pad, n3p), jnp.float32),
        grid=grid,
        in_specs=in_specs,
        out_specs=out_specs,
        compiler_params=pltpu.CompilerParams(dimension_semantics=("parallel",)),
        cost_estimate=cost,
    )(x_pad, packed["wl"], packed["bl"], packed["m1"], packed["b1"],
      packed["m2"], packed["b2"], packed["m3"], packed["b3"])

    H, W = meta["out_hw"]
    return out_flat[:B, :meta["n_out"]].reshape(B, n_channels, H, W)


# --------------------------- pure-JAX reference ----------------------------- #
def reference_forward(x, raw):
    h = jnp.maximum(x @ raw["w_lin"].T + raw["b_lin"], 0.0)
    h = h.reshape(x.shape[0], 8, 4, 4)

    def convT(h, w, b, k, s, p):
        # ConvTranspose2d == input-dilated conv with spatially-flipped, IO-swapped kernel
        kflip = jnp.transpose(w, (1, 0, 2, 3))[:, :, ::-1, ::-1]
        y = lax.conv_general_dilated(
            h, kflip, window_strides=(1, 1),
            padding=[(k - 1 - p, k - 1 - p)] * 2,
            lhs_dilation=(s, s),
            dimension_numbers=("NCHW", "OIHW", "NCHW"))
        return y + b[None, :, None, None]

    h = jnp.maximum(convT(h, raw["w1"], raw["b1"], 3, 2, 1), 0.0)
    h = jnp.maximum(convT(h, raw["w2"], raw["b2"], 3, 2, 1), 0.0)
    h = jax.nn.sigmoid(convT(h, raw["w3"], raw["b3"], 6, 2, 1))
    return h


# ---------------------------------- main ------------------------------------ #
if __name__ == "__main__":
    n_channels, lat_size, batch = 1, 32, 2

    key = jax.random.PRNGKey(0)
    kx, kp = jax.random.split(key)
    x = jax.random.normal(kx, (batch, lat_size), jnp.float32)
    raw = init_raw_params(kp, n_channels, lat_size)
    y_ref = jax.block_until_ready(reference_forward(x, raw))

    # f32-weight path: tight correctness check against the pure-JAX reference.
    packed_f32, meta = pack_params(raw, n_channels, weight_dtype=jnp.float32)
    y = jax.block_until_ready(decoder_forward(x, packed_f32, n_channels, meta))
    assert y.shape == (batch, n_channels, 28, 28), y.shape
    np.testing.assert_allclose(np.asarray(y), np.asarray(y_ref),
                               rtol=1e-5, atol=1e-5)

    # bf16-weight path (v6e/v7x full-rate MXU feed, f32 accumulation).
    packed_bf16, meta_b = pack_params(raw, n_channels, weight_dtype=jnp.bfloat16)
    y_b = jax.block_until_ready(decoder_forward(x, packed_bf16, n_channels, meta_b))
    assert y_b.shape == (batch, n_channels, 28, 28), y_b.shape
    np.testing.assert_allclose(np.asarray(y_b), np.asarray(y_ref),
                               rtol=5e-2, atol=3e-2)

    print("KERNEL_OK")
</pallas_src>

<mosaic_0001>
module attributes {stable_mosaic.version = 11 : i64} {
  func.func @decoder_kernel(%arg0: i32, %arg1: memref<8x32xf32, #tpu.memory_space<vmem>>, %arg2: memref<32x128xf32, #tpu.memory_space<vmem>>, %arg3: memref<1x128xf32, #tpu.memory_space<vmem>>, %arg4: memref<128x256xf32, #tpu.memory_space<vmem>>, %arg5: memref<1x256xf32, #tpu.memory_space<vmem>>, %arg6: memref<256x384xf32, #tpu.memory_space<vmem>>, %arg7: memref<1x384xf32, #tpu.memory_space<vmem>>, %arg8: memref<384x896xf32, #tpu.memory_space<vmem>>, %arg9: memref<1x896xf32, #tpu.memory_space<vmem>>, %arg10: memref<8x896xf32, #tpu.memory_space<vmem>>) attributes {dimension_semantics = [#tpu.dimension_semantics<parallel>], iteration_bounds = array<i64: 1>, scalar_prefetch = 0 : i64, scratch_operands = 0 : i64, tpu.core_type = #tpu.core_type<tc>, window_params = [{transform_indices = @transform_0, window_bounds = array<i64: 8, 32>}, {pipeline_mode = #tpu.pipeline_mode<synchronous>, transform_indices = @transform_1, window_bounds = array<i64: 32, 128>}, {pipeline_mode = #tpu.pipeline_mode<synchronous>, transform_indices = @transform_2, window_bounds = array<i64: 1, 128>}, {pipeline_mode = #tpu.pipeline_mode<synchronous>, transform_indices = @transform_3, window_bounds = array<i64: 128, 256>}, {pipeline_mode = #tpu.pipeline_mode<synchronous>, transform_indices = @transform_4, window_bounds = array<i64: 1, 256>}, {pipeline_mode = #tpu.pipeline_mode<synchronous>, transform_indices = @transform_5, window_bounds = array<i64: 256, 384>}, {pipeline_mode = #tpu.pipeline_mode<synchronous>, transform_indices = @transform_6, window_bounds = array<i64: 1, 384>}, {pipeline_mode = #tpu.pipeline_mode<synchronous>, transform_indices = @transform_7, window_bounds = array<i64: 384, 896>}, {pipeline_mode = #tpu.pipeline_mode<synchronous>, transform_indices = @transform_8, window_bounds = array<i64: 1, 896>}, {transform_indices = @transform_9, window_bounds = array<i64: 8, 896>}]} {
    %c0 = arith.constant 0 : index
    %c0_0 = arith.constant 0 : index
    %0 = vector.load %arg1[%c0, %c0_0] : memref<8x32xf32, #tpu.memory_space<vmem>>, vector<8x32xf32>
    %c0_1 = arith.constant 0 : index
    %c0_2 = arith.constant 0 : index
    %1 = vector.load %arg2[%c0_1, %c0_2] : memref<32x128xf32, #tpu.memory_space<vmem>>, vector<32x128xf32>
    %cst = arith.constant dense<0.000000e+00> : vector<8x128xf32>
    %2 = tpu.matmul %0, %1, %cst {dimension_numbers = #tpu.dot_dimension_numbers<[1], [0], [0], [1], [0, 0, 1, 1], [], []>} : vector<8x32xf32>, vector<32x128xf32>, vector<8x128xf32> -> vector<8x128xf32>
    %c0_3 = arith.constant 0 : index
    %c0_4 = arith.constant 0 : index
    %3 = vector.load %arg3[%c0_3, %c0_4] : memref<1x128xf32, #tpu.memory_space<vmem>>, vector<1x128xf32>
    %4 = vector.broadcast %3 : vector<1x128xf32> to vector<8x128xf32>
    %5 = arith.addf %2, %4 : vector<8x128xf32>
    %cst_5 = arith.constant 0.000000e+00 : f32
    %6 = vector.broadcast %cst_5 : f32 to vector<8x128xf32>
    %7 = arith.maximumf %5, %6 : vector<8x128xf32>
    %c0_6 = arith.constant 0 : index
    %c0_7 = arith.constant 0 : index
    %8 = vector.load %arg4[%c0_6, %c0_7] : memref<128x256xf32, #tpu.memory_space<vmem>>, vector<128x256xf32>
    %cst_8 = arith.constant dense<0.000000e+00> : vector<8x256xf32>
    %9 = tpu.matmul %7, %8, %cst_8 {dimension_numbers = #tpu.dot_dimension_numbers<[1], [0], [0], [1], [0, 0, 1, 1], [], []>} : vector<8x128xf32>, vector<128x256xf32>, vector<8x256xf32> -> vector<8x256xf32>
    %c0_9 = arith.constant 0 : index
    %c0_10 = arith.constant 0 : index
    %10 = vector.load %arg5[%c0_9, %c0_10] : memref<1x256xf32, #tpu.memory_space<vmem>>, vector<1x256xf32>
    %11 = vector.broadcast %10 : vector<1x256xf32> to vector<8x256xf32>
    %12 = arith.addf %9, %11 : vector<8x256xf32>
    %cst_11 = arith.constant 0.000000e+00 : f32
    %13 = vector.broadcast %cst_11 : f32 to vector<8x256xf32>
    %14 = arith.maximumf %12, %13 : vector<8x256xf32>
    %c0_12 = arith.constant 0 : index
    %c0_13 = arith.constant 0 : index
    %15 = vector.load %arg6[%c0_12, %c0_13] : memref<256x384xf32, #tpu.memory_space<vmem>>, vector<256x384xf32>
    %cst_14 = arith.constant dense<0.000000e+00> : vector<8x384xf32>
    %16 = tpu.matmul %14, %15, %cst_14 {dimension_numbers = #tpu.dot_dimension_numbers<[1], [0], [0], [1], [0, 0, 1, 1], [], []>} : vector<8x256xf32>, vector<256x384xf32>, vector<8x384xf32> -> vector<8x384xf32>
    %c0_15 = arith.constant 0 : index
    %c0_16 = arith.constant 0 : index
    %17 = vector.load %arg7[%c0_15, %c0_16] : memref<1x384xf32, #tpu.memory_space<vmem>>, vector<1x384xf32>
    %18 = vector.broadcast %17 : vector<1x384xf32> to vector<8x384xf32>
    %19 = arith.addf %16, %18 : vector<8x384xf32>
    %cst_17 = arith.constant 0.000000e+00 : f32
    %20 = vector.broadcast %cst_17 : f32 to vector<8x384xf32>
    %21 = arith.maximumf %19, %20 : vector<8x384xf32>
    %c0_18 = arith.constant 0 : index
    %c0_19 = arith.constant 0 : index
    %22 = vector.load %arg8[%c0_18, %c0_19] : memref<384x896xf32, #tpu.memory_space<vmem>>, vector<384x896xf32>
    %cst_20 = arith.constant dense<0.000000e+00> : vector<8x896xf32>
    %23 = tpu.matmul %21, %22, %cst_20 {dimension_numbers = #tpu.dot_dimension_numbers<[1], [0], [0], [1], [0, 0, 1, 1], [], []>} : vector<8x384xf32>, vector<384x896xf32>, vector<8x896xf32> -> vector<8x896xf32>
    %c0_21 = arith.constant 0 : index
    %c0_22 = arith.constant 0 : index
    %24 = vector.load %arg9[%c0_21, %c0_22] : memref<1x896xf32, #tpu.memory_space<vmem>>, vector<1x896xf32>
    %25 = vector.broadcast %24 : vector<1x896xf32> to vector<8x896xf32>
    %26 = arith.addf %23, %25 : vector<8x896xf32>
    %27 = arith.negf %26 : vector<8x896xf32>
    %28 = math.exp %27 : vector<8x896xf32>
    %cst_23 = arith.constant 1.000000e+00 : f32
    %29 = vector.broadcast %cst_23 : f32 to vector<8x896xf32>
    %30 = arith.addf %29, %28 : vector<8x896xf32>
    %31 = arith.divf %29, %30 : vector<8x896xf32>
    %c0_24 = arith.constant 0 : index
    %c0_25 = arith.constant 0 : index
    %32 = vector.load %arg10[%c0_24, %c0_25] : memref<8x896xf32, #tpu.memory_space<vmem>>, vector<8x896xf32>
    tpu.vector_store %arg10[%c0_24, %c0_25], %31 {strides = array<i32>} : memref<8x896xf32, #tpu.memory_space<vmem>>, vector<8x896xf32>,
    return
  }
  func.func @transform_0(%arg0: i32) -> (i32, i32) {
    %c0_i32 = arith.constant 0 : i32
    %c0_i32_0 = arith.constant 0 : i32
    return %arg0, %c0_i32 : i32, i32
  }
  func.func @transform_1(%arg0: i32) -> (i32, i32) {
    %c0_i32 = arith.constant 0 : i32
    %c0_i32_0 = arith.constant 0 : i32
    %c0_i32_1 = arith.constant 0 : i32
    return %c0_i32, %c0_i32_0 : i32, i32
  }
  func.func @transform_2(%arg0: i32) -> (i32, i32) {
    %c0_i32 = arith.constant 0 : i32
    %c0_i32_0 = arith.constant 0 : i32
    %c0_i32_1 = arith.constant 0 : i32
    return %c0_i32, %c0_i32_0 : i32, i32
  }
  func.func @transform_3(%arg0: i32) -> (i32, i32) {
    %c0_i32 = arith.constant 0 : i32
    %c0_i32_0 = arith.constant 0 : i32
    %c0_i32_1 = arith.constant 0 : i32
    return %c0_i32, %c0_i32_0 : i32, i32
  }
  func.func @transform_4(%arg0: i32) -> (i32, i32) {
    %c0_i32 = arith.constant 0 : i32
    %c0_i32_0 = arith.constant 0 : i32
    %c0_i32_1 = arith.constant 0 : i32
    return %c0_i32, %c0_i32_0 : i32, i32
  }
  func.func @transform_5(%arg0: i32) -> (i32, i32) {
    %c0_i32 = arith.constant 0 : i32
    %c0_i32_0 = arith.constant 0 : i32
    %c0_i32_1 = arith.constant 0 : i32
    return %c0_i32, %c0_i32_0 : i32, i32
  }
  func.func @transform_6(%arg0: i32) -> (i32, i32) {
    %c0_i32 = arith.constant 0 : i32
    %c0_i32_0 = arith.constant 0 : i32
    %c0_i32_1 = arith.constant 0 : i32
    return %c0_i32, %c0_i32_0 : i32, i32
  }
  func.func @transform_7(%arg0: i32) -> (i32, i32) {
    %c0_i32 = arith.constant 0 : i32
    %c0_i32_0 = arith.constant 0 : i32
    %c0_i32_1 = arith.constant 0 : i32
    return %c0_i32, %c0_i32_0 : i32, i32
  }
  func.func @transform_8(%arg0: i32) -> (i32, i32) {
    %c0_i32 = arith.constant 0 : i32
    %c0_i32_0 = arith.constant 0 : i32
    %c0_i32_1 = arith.constant 0 : i32
    return %c0_i32, %c0_i32_0 : i32, i32
  }
  func.func @transform_9(%arg0: i32) -> (i32, i32) {
    %c0_i32 = arith.constant 0 : i32
    %c0_i32_0 = arith.constant 0 : i32
    return %arg0, %c0_i32 : i32, i32
  }
}

</mosaic_0001>

<bundles_post_ra>
// kernel: tpu_custom_call.1
= control target key start
LH: loop header
LB: loop body
LE: loop exit
PB: predicated region body
PF: predicated region fallthrough
CT: control target
= control target key end

     0   :  { %14 = vsyncpa [#allocation3], 0  ;;  %s2198_s0 = inlined_call_operand.hbm [shape: f32[8,32], index: 0, kind: input, shape index: {}]   ;;  %s2199_s1 = inlined_call_operand.hbm [shape: f32[32,128], index: 1, kind: input, shape index: {}]   ;;  %s2200_s2 = inlined_call_operand.hbm [shape: f32[1,128], index: 2, kind: input, shape index: {}]   ;;  %s2201_s3 = inlined_call_operand.hbm [shape: f32[128,256], index: 3, kind: input, shape index: {}]   ;;  %s2202_s4 = inlined_call_operand.hbm [shape: f32[1,256], index: 4, kind: input, shape index: {}]   ;;  %s2203_s5 = inlined_call_operand.hbm [shape: f32[256,384], index: 5, kind: input, shape index: {}]   ;;  %s2204_s6 = inlined_call_operand.hbm [shape: f32[1,384], index: 6, kind: input, shape index: {}]   ;;  %s2205_s7 = inlined_call_operand.hbm [shape: f32[384,896], index: 7, kind: input, shape index: {}]   ;;  %s2206_s8 = inlined_call_operand.hbm [shape: f32[1,896], index: 8, kind: input, shape index: {}]   ;;  %s2207_s9 = inlined_call_operand.hbm [shape: f32[8,896], index: 9, kind: output, shape index: {}]  }
   0x1   :  { %15 = vsyncpa [#allocation6], 0 }
   0x2   :  { %16 = vsyncpa [#allocation9], 0 }
   0x3   :  { %17 = vsyncpa [#allocation12], 0 }
   0x4   :  { %18 = vsyncpa [#allocation15], 0 }
   0x5   :  { %19 = vsyncpa [#allocation4], 0  ;;  %s2020_s30 = smov [#allocation5]  }
   0x6   :  { %s35_s10 = sshll.u32 %s2020_s30, 4  ;;  %s36_s10 = int_to_ptr.vmem [resolvable:$true] %s35_s10 }
   0x7   :  { %s1816_s11 = scalar_lea.vmem %s36_s10, 512  ;;  %p1821_p1 = scmp.lt.s32.totalorder %s36_s10, %s36_s10 }
   0x8   :  { %p1817_p0 = scmp.ne.s32.totalorder %s36_s10, %s1816_s11  ;;  %p1822_p2 = scmp.lt.s32.totalorder %s1816_s11, %s1816_s11 }
   0xa   :  { %p1823_p3 = por %p1822_p2, %p1821_p1 }
   0xc   :  { %p1824_p4 = pnand %p1823_p3, %p1817_p0 }
   0xe   :  { %1827 = shalt.err (!%p1824_p4)
}
   0xf   :  { %s2021_s12 = smov 128   ;;  %s2022_s13 = smov 8  }
  0x10   :  { %41 = dma.hbm_to_vmem [thread:$0]  %s2199_s1, 512, %s36_s10, [#allocation6], %s2021_s12, %s2021_s12, %s2022_s13  }
  0x11   :  { %s2023_s16 = smov [#allocation8]  }
  0x12   :  { %s57_s17 = sshll.u32 %s2023_s16, 4  ;;  %s58_s17 = int_to_ptr.vmem [resolvable:$true] %s57_s17 }
  0x13   :  { %s1836_s18 = scalar_lea.vmem %s58_s17, 4096  ;;  %p1841_p6 = scmp.lt.s32.totalorder %s58_s17, %s58_s17 }
  0x14   :  { %p1837_p5 = scmp.ne.s32.totalorder %s58_s17, %s1836_s18  ;;  %p1842_p7 = scmp.lt.s32.totalorder %s1836_s18, %s1836_s18 }
  0x16   :  { %p1843_p8 = por %p1842_p7, %p1841_p6 }
  0x18   :  { %p1844_p9 = pnand %p1843_p8, %p1837_p5 }
  0x1a   :  { %1847 = shalt.err (!%p1844_p9)
}
  0x1b   :  { %s2024_s19 = smov 256   ;;  %s2025_s20 = smov 16  }
  0x1c   :  { %63 = dma.hbm_to_vmem [thread:$0]  %s2201_s3, 4096, %s58_s17, [#allocation9], %s2024_s19, %s2024_s19, %s2025_s20  }
  0x1d   :  { %s2026_s23 = smov [#allocation11]  }
  0x1e   :  { %s79_s24 = sshll.u32 %s2026_s23, 4  ;;  %s80_s24 = int_to_ptr.vmem [resolvable:$true] %s79_s24 }
  0x1f   :  { %s1856_s1 = scalar_lea.vmem %s80_s24, 12288  ;;  %p1861_p11 = scmp.lt.s32.totalorder %s80_s24, %s80_s24 }
  0x20   :  { %p1857_p10 = scmp.ne.s32.totalorder %s80_s24, %s1856_s1  ;;  %p1862_p12 = scmp.lt.s32.totalorder %s1856_s1, %s1856_s1 }
  0x22   :  { %p1863_p13 = por %p1862_p12, %p1861_p11 }
  0x24   :  { %p1864_p0 = pnand %p1863_p13, %p1857_p10 }
  0x26   :  { %1867 = shalt.err (!%p1864_p0)
}
  0x27   :  { %s2027_s25 = smov 384   ;;  %s2028_s26 = smov 24  }
  0x28   :  { %85 = dma.hbm_to_vmem [thread:$0]  %s2203_s5, 12288, %s80_s24, [#allocation12], %s2027_s25, %s2027_s25, %s2028_s26  }
  0x29   :  { %s2029_s29 = smov [#allocation14]  }
  0x2a   :  { %s101_s30 = sshll.u32 %s2029_s29, 4  ;;  %s102_s30 = int_to_ptr.vmem [resolvable:$true] %s101_s30 }
  0x2b   :  { %s1876_s3 = scalar_lea.vmem %s102_s30, 43008  ;;  %p1881_p2 = scmp.lt.s32.totalorder %s102_s30, %s102_s30 }
  0x2c   :  { %p1877_p1 = scmp.ne.s32.totalorder %s102_s30, %s1876_s3  ;;  %p1882_p3 = scmp.lt.s32.totalorder %s1876_s3, %s1876_s3 }
  0x2e   :  { %p1883_p4 = por %p1882_p3, %p1881_p2 }
  0x30   :  { %p1884_p5 = pnand %p1883_p4, %p1877_p1 }
  0x32   :  { %1887 = shalt.err (!%p1884_p5)
}
  0x33   :  { %s2030_s10 = smov 896   ;;  %s2031_s11 = smov 56  }
  0x34   :  { %107 = dma.hbm_to_vmem [thread:$0]  %s2205_s7, 43008, %s102_s30, [#allocation15], %s2030_s10, %s2030_s10, %s2031_s11  }
  0x35   :  { %s2032_s14 = smov [#allocation2]   ;;  %s2033_s16 = smov [#allocation7]  }
  0x36   :  { %s26_s15 = sshll.u32 %s2032_s14, 4  ;;  %s48_s5 = sshll.u32 %s2033_s16, 4  ;;  %s27_s15 = int_to_ptr.vmem [resolvable:$true] %s26_s15  ;;  %s49_s5 = int_to_ptr.vmem [resolvable:$true] %s48_s5 }
  0x37   :  { %s1896_s17 = scalar_lea.vmem %s27_s15, 128  ;;  %p1901_p7 = scmp.lt.s32.totalorder %s27_s15, %s27_s15 }
  0x38   :  { %p1897_p6 = scmp.ne.s32.totalorder %s27_s15, %s1896_s17  ;;  %p1902_p8 = scmp.lt.s32.totalorder %s1896_s17, %s1896_s17 }
  0x3a   :  { %p1903_p9 = por %p1902_p8, %p1901_p7 }
  0x3c   :  { %p1904_p10 = pnand %p1903_p9, %p1897_p6 }
  0x3e   :  { %1907 = shalt.err (!%p1904_p10)
}
  0x3f   :  { %29 = dma.hbm_to_vmem [thread:$0]  %s2198_s0, 128, %s27_s15, [#allocation3]  }
  0x40   :  { %s1916_s20 = scalar_lea.vmem %s49_s5, 16  ;;  %s1920_s7 = scalar_lea.vmem %s49_s5, 32 }
  0x41   :  { %p1917_p11 = scmp.ne.s32.totalorder %s49_s5, %s1916_s20  ;;  %p1921_p12 = scmp.lt.s32.totalorder %s49_s5, %s49_s5 }
  0x42   :  { %p1922_p13 = scmp.lt.s32.totalorder %s1920_s7, %s1916_s20 }
  0x44   :  { %p1923_p0 = por %p1922_p13, %p1921_p12 }
  0x46   :  { %p1924_p1 = pnand %p1923_p0, %p1917_p11 }
  0x48   :  { %1927 = shalt.err (!%p1924_p1)
}
  0x49   :  { %51 = dma.hbm_to_vmem [thread:$0]  %s2200_s2, 16, %s49_s5, [#allocation6]  }
  0x4a   :  { %s2034_s23 = smov [#allocation10]   ;;  %s2035_s1 = smov [#allocation13]  }
  0x4b   :  { %s70_s24 = sshll.u32 %s2034_s23, 4  ;;  %s92_s25 = sshll.u32 %s2035_s1, 4  ;;  %s71_s24 = int_to_ptr.vmem [resolvable:$true] %s70_s24  ;;  %s93_s25 = int_to_ptr.vmem [resolvable:$true] %s92_s25 }
  0x4c   :  { %s1936_s26 = scalar_lea.vmem %s71_s24, 32  ;;  %p1941_p3 = scmp.lt.s32.totalorder %s71_s24, %s71_s24 }
  0x4d   :  { %p1937_p2 = scmp.ne.s32.totalorder %s71_s24, %s1936_s26  ;;  %p1942_p4 = scmp.lt.s32.totalorder %s1936_s26, %s1936_s26 }
  0x4f   :  { %p1943_p5 = por %p1942_p4, %p1941_p3 }
  0x51   :  { %p1944_p6 = pnand %p1943_p5, %p1937_p2 }
  0x53   :  { %1947 = shalt.err (!%p1944_p6)
}
  0x54   :  { %73 = dma.hbm_to_vmem [thread:$0]  %s2202_s4, 32, %s71_s24, [#allocation9]  }
  0x55   :  { %s1956_s28 = scalar_lea.vmem %s93_s25, 48  ;;  %s1960_s2 = scalar_lea.vmem %s93_s25, 64 }
  0x56   :  { %p1957_p7 = scmp.ne.s32.totalorder %s93_s25, %s1956_s28  ;;  %p1961_p8 = scmp.lt.s32.totalorder %s93_s25, %s93_s25 }
  0x57   :  { %p1962_p9 = scmp.lt.s32.totalorder %s1960_s2, %s1956_s28 }
  0x59   :  { %p1963_p10 = por %p1962_p9, %p1961_p8 }
  0x5b   :  { %p1964_p11 = pnand %p1963_p10, %p1957_p7 }
  0x5d   :  { %1967 = shalt.err (!%p1964_p11)
}
  0x5e   :  { %95 = dma.hbm_to_vmem [thread:$0]  %s2204_s6, 48, %s93_s25, [#allocation12]  }
  0x5f   :  { %s2036_s3 = smov [#allocation16]  }
  0x60   :  { %s114_s10 = sshll.u32 %s2036_s3, 4  ;;  %s115_s10 = int_to_ptr.vmem [resolvable:$true] %s114_s10 }
  0x61   :  { %s1976_s11 = scalar_lea.vmem %s115_s10, 112  ;;  %s1980_s12 = scalar_lea.vmem %s115_s10, 128 }
  0x62   :  { %p1977_p12 = scmp.ne.s32.totalorder %s115_s10, %s1976_s11  ;;  %p1981_p13 = scmp.lt.s32.totalorder %s115_s10, %s115_s10 }
  0x63   :  { %p1982_p0 = scmp.lt.s32.totalorder %s1980_s12, %s1976_s11 }
  0x65   :  { %p1983_p1 = por %p1982_p0, %p1981_p13 }
  0x67   :  { %p1984_p2 = pnand %p1983_p1, %p1977_p12 }
  0x69   :  { %1987 = shalt.err (!%p1984_p2)
}
  0x6a   :  { %117 = dma.hbm_to_vmem [thread:$0]  %s2206_s8, 112, %s115_s10, [#allocation15]  }
  0x6b   :  { %2008 = dma.done.wait [#allocation3], 128  }
  0x6c   :  { %2009 = vsyncadd [#allocation3], 4294967168 }
  0x6d   :  { %2010 = dma.done.wait [#allocation6], 528  }
  0x6e   :  { %2011 = vsyncadd [#allocation6], 4294966768 }
  0x6f   :  { %2012 = dma.done.wait [#allocation9], 4128  }
  0x70   :  { %2013 = vsyncadd [#allocation9], 4294963168 }
  0x71   :  { %2014 = dma.done.wait [#allocation12], 12336  }
  0x72   :  { %2015 = vsyncadd [#allocation12], 4294954960 }
  0x73   :  { %2016 = dma.done.wait [#allocation15], 43120  }
  0x74   :  { %2017 = vsyncadd [#allocation15], 4294924176  ;;  %v2037_v0 = vmov 0.0   ;;  %vm2038_vm0 = vmmov 0   ;;  %v149_v1 = vld [vmem:[#allocation5 + $0x18] sm:$0xff]  ;;  %v148_v2 = vld [vmem:[#allocation5 + $0x10] sm:$0xff] }
  0x75   :  { %1714 = vmatprep.subr.mxu0 %v2037_v0  ;;  %1722 = vmatprep.mubr.msk.f32.mxu0 %vm2038_vm0, %v2037_v0  ;;  %v147_v3 = vld [vmem:[#allocation5 + $0x8] sm:$0xff]  ;;  %v263_v4 = vld [vmem:[#allocation8 + $0xf8] sm:$0xff]  ;;  %v262_v5 = vld [vmem:[#allocation8 + $0xf0] sm:$0xff]  ;;  %vm157_vm1 = vcmask 261120   ;;  %s2039_s6 = smov [#allocation17]  }
  0x76   :  { %340 = vmatprep.mubr.f32.mxu1 %v2037_v0  ;;  %1715 = vmatpush3.msra.mxu0 %v149_v1  ;;  %v261_v6 = vld [vmem:[#allocation8 + $0xe8] sm:$0xff]  ;;  %v260_v7 = vld [vmem:[#allocation8 + $0xe0] sm:$0xff]  ;;  %v259_v8 = vld [vmem:[#allocation8 + $0xd8] sm:$0xff]  ;;  %s1600_s8 = sshll.u32 %s2039_s6, 4  ;;  %s1601_s8 = int_to_ptr.vmem [resolvable:$true] %s1600_s8 }
  0x77   :  { %1716 = vmatprep.subr.mxu0 %v2037_v0  ;;  %276 = vmatprep.subr.mxu1 %v263_v4  ;;  %v146_v9 = vld [vmem:[#allocation5] sm:$0xff]  ;;  %v258_v10 = vld [vmem:[#allocation8 + $0xd0] sm:$0xff]  ;;  %v257_v12 = vld [vmem:[#allocation8 + $0xc8] sm:$0xff]  ;;  %s1988_s14 = scalar_lea.vmem %s1601_s8, 896  ;;  %p1993_p4 = scmp.lt.s32.totalorder %s1601_s8, %s1601_s8 }
  0x78   :  { %1717 = vmatpush3.msra.mxu0 %v148_v2  ;;  %277 = vmatpush1.msra.mxu1 %v262_v5  ;;  %v145_v11 = vld [vmem:[#allocation2] sm:$0xff]  ;;  %v256_v13 = vld [vmem:[#allocation8 + $0xc0] sm:$0xff]  ;;  %v253_v16 = vld [vmem:[#allocation8 + $0xa8] sm:$0xff]  ;;  %p1989_p3 = scmp.ne.s32.totalorder %s1601_s8, %s1988_s14  ;;  %p1994_p5 = scmp.lt.s32.totalorder %s1988_s14, %s1988_s14 }
  0x79   :  { %1718 = vmatprep.subr.mxu0 %v2037_v0  ;;  %278 = vmatprep.subr.mxu1 %v261_v6  ;;  %v255_v14 = vld [vmem:[#allocation8 + $0xb8] sm:$0xff]  ;;  %v254_v15 = vld [vmem:[#allocation8 + $0xb0] sm:$0xff]  ;;  %v252_v17 = vld [vmem:[#allocation8 + $0xa0] sm:$0xff] }
  0x7a   :  { %1719 = vmatpush3.msra.mxu0 %v147_v3  ;;  %279 = vmatpush1.msra.mxu1 %v260_v7  ;;  %v251_v18 = vld [vmem:[#allocation8 + $0x98] sm:$0xff]  ;;  %v250_v19 = vld [vmem:[#allocation8 + $0x90] sm:$0xff]  ;;  %v249_v20 = vld [vmem:[#allocation8 + $0x88] sm:$0xff]  ;;  %p1995_p6 = por %p1994_p5, %p1993_p4 }
  0x7b   :  { %1720 = vmatprep.subr.mxu0 %v2037_v0  ;;  %280 = vmatprep.subr.mxu1 %v259_v8  ;;  %v248_v21 = vld [vmem:[#allocation8 + $0x80] sm:$0xff]  ;;  %v247_v22 = vld [vmem:[#allocation8 + $0x78] sm:$0xff]  ;;  %v246_v23 = vld [vmem:[#allocation8 + $0x70] sm:$0xff] }
  0x7c   :  { %1721 = vmatpush3.msra.mxu0 %v146_v9  ;;  %281 = vmatpush1.msra.mxu1 %v258_v10  ;;  %v245_v24 = vld [vmem:[#allocation8 + $0x68] sm:$0xff]  ;;  %v244_v25 = vld [vmem:[#allocation8 + $0x60] sm:$0xff]  ;;  %v243_v26 = vld [vmem:[#allocation8 + $0x58] sm:$0xff]  ;;  %p1996_p7 = pnand %p1995_p6, %p1989_p3 }
  0x7d   :  { %1723 = vmatmul.mubr.msk.f32.vlgmr.msra.gmra.mxu0 %vm157_vm1, %v145_v11  ;;  %282 = vmatprep.subr.mxu1 %v257_v12  ;;  %v242_v27 = vld [vmem:[#allocation8 + $0x50] sm:$0xff]  ;;  %v241_v28 = vld [vmem:[#allocation8 + $0x48] sm:$0xff]  ;;  %v240_v29 = vld [vmem:[#allocation8 + $0x40] sm:$0xff] }
  0x7e   :  { %283 = vmatpush1.msra.mxu1 %v256_v13  ;;  %v239_v30 = vld [vmem:[#allocation8 + $0x38] sm:$0xff]  ;;  %v238_v31 = vld [vmem:[#allocation8 + $0x30] sm:$0xff]  ;;  %v237_v32 = vld [vmem:[#allocation8 + $0x28] sm:$0xff] }
  0x7f   :  { %284 = vmatprep.subr.mxu1 %v255_v14  ;;  %v236_v33 = vld [vmem:[#allocation8 + $0x20] sm:$0xff]  ;;  %v235_v34 = vld [vmem:[#allocation8 + $0x18] sm:$0xff]  ;;  %v234_v35 = vld [vmem:[#allocation8 + $0x10] sm:$0xff] }
  0x80   :  { %285 = vmatpush1.msra.mxu1 %v254_v15  ;;  %v233_v36 = vld [vmem:[#allocation8 + $0x8] sm:$0xff]  ;;  %v232_v37 = vld [vmem:[#allocation8] sm:$0xff]  ;;  %v395_v38 = vld [vmem:[#allocation11 + $0x170] sm:$0xff] }
  0x81   :  { %286 = vmatprep.subr.mxu1 %v253_v16  ;;  %v394_v39 = vld [vmem:[#allocation11 + $0x168] sm:$0xff]  ;;  %v392_v40 = vld [vmem:[#allocation11 + $0x158] sm:$0xff]  ;;  %462 = vmatprep.subr.mxu0 %v395_v38  ;;  %v391_v41 = vld [vmem:[#allocation11 + $0x150] sm:$0xff] }
  0x82   :  { %287 = vmatpush1.msra.mxu1 %v252_v17  ;;  %463 = vmatpush1.msra.mxu0 %v394_v39  ;;  %v389_v42 = vld [vmem:[#allocation11 + $0x140] sm:$0xff]  ;;  %v388_v43 = vld [vmem:[#allocation11 + $0x138] sm:$0xff]  ;;  %v386_v44 = vld [vmem:[#allocation11 + $0x128] sm:$0xff] }
  0x83   :  { %288 = vmatprep.subr.mxu1 %v251_v18  ;;  %464 = vmatprep.subr.mxu0 %v392_v40  ;;  %v385_v45 = vld [vmem:[#allocation11 + $0x120] sm:$0xff]  ;;  %v383_v46 = vld [vmem:[#allocation11 + $0x110] sm:$0xff]  ;;  %v382_v47 = vld [vmem:[#allocation11 + $0x108] sm:$0xff] }
  0x84   :  { %289 = vmatpush1.msra.mxu1 %v250_v19  ;;  %465 = vmatpush1.msra.mxu0 %v391_v41  ;;  %v380_v48 = vld [vmem:[#allocation11 + $0xf8] sm:$0xff]  ;;  %v379_v49 = vld [vmem:[#allocation11 + $0xf0] sm:$0xff]  ;;  %v377_v50 = vld [vmem:[#allocation11 + $0xe0] sm:$0xff] }
  0x85   :  { %290 = vmatprep.subr.mxu1 %v249_v20  ;;  %466 = vmatprep.subr.mxu0 %v389_v42  ;;  %v376_v51 = vld [vmem:[#allocation11 + $0xd8] sm:$0xff]  ;;  %v374_v53 = vld [vmem:[#allocation11 + $0xc8] sm:$0xff]  ;;  %v373_v54 = vld [vmem:[#allocation11 + $0xc0] sm:$0xff] }
  0x86   :  { %291 = vmatpush1.msra.mxu1 %v248_v21  ;;  %467 = vmatpush1.msra.mxu0 %v388_v43  ;;  %v444_v52 = vld [vmem:[#allocation11 + $0x2f8] sm:$0xff]  ;;  %v371_v55 = vld [vmem:[#allocation11 + $0xb0] sm:$0xff]  ;;  %v370_v56 = vld [vmem:[#allocation11 + $0xa8] sm:$0xff] }
  0x87   :  { %292 = vmatprep.subr.mxu1 %v247_v22  ;;  %468 = vmatprep.subr.mxu0 %v386_v44  ;;  %v368_v57 = vld [vmem:[#allocation11 + $0x98] sm:$0xff]  ;;  %v367_v58 = vld [vmem:[#allocation11 + $0x90] sm:$0xff]  ;;  %v365_v59 = vld [vmem:[#allocation11 + $0x80] sm:$0xff] }
  0x88   :  { %293 = vmatpush1.msra.mxu1 %v246_v23  ;;  %469 = vmatpush1.msra.mxu0 %v385_v45  ;;  %v364_v60 = vld [vmem:[#allocation11 + $0x78] sm:$0xff]  ;;  %v362_v61 = vld [vmem:[#allocation11 + $0x68] sm:$0xff]  ;;  %v361_v62 = vld [vmem:[#allocation11 + $0x60] sm:$0xff] }
  0x89   :  { %294 = vmatprep.subr.mxu1 %v245_v24  ;;  %470 = vmatprep.subr.mxu0 %v383_v46  ;;  %v359_v63 = vld [vmem:[#allocation11 + $0x50] sm:$0xff]  ;;  %v358_v1 = vld [vmem:[#allocation11 + $0x48] sm:$0xff]  ;;  %v356_v2 = vld [vmem:[#allocation11 + $0x38] sm:$0xff] }
  0x8a   :  { %295 = vmatpush1.msra.mxu1 %v244_v25  ;;  %471 = vmatpush1.msra.mxu0 %v382_v47  ;;  %v355_v3 = vld [vmem:[#allocation11 + $0x30] sm:$0xff]  ;;  %v353_v4 = vld [vmem:[#allocation11 + $0x20] sm:$0xff]  ;;  %v352_v5 = vld [vmem:[#allocation11 + $0x18] sm:$0xff] }
  0x8b   :  { %296 = vmatprep.subr.mxu1 %v243_v26  ;;  %472 = vmatprep.subr.mxu0 %v380_v48  ;;  %v350_v6 = vld [vmem:[#allocation11 + $0x8] sm:$0xff]  ;;  %v349_v7 = vld [vmem:[#allocation11] sm:$0xff]  ;;  %v443_v8 = vld [vmem:[#allocation11 + $0x2f0] sm:$0xff] }
  0x8c   :  { %297 = vmatpush1.msra.mxu1 %v242_v27  ;;  %473 = vmatpush1.msra.mxu0 %v379_v49  ;;  %v442_v9 = vld [vmem:[#allocation11 + $0x2e8] sm:$0xff]  ;;  %v440_v10 = vld [vmem:[#allocation11 + $0x2d8] sm:$0xff]  ;;  %v439_v11 = vld [vmem:[#allocation11 + $0x2d0] sm:$0xff] }
  0x8d   :  { %298 = vmatprep.subr.mxu1 %v241_v28  ;;  %474 = vmatprep.subr.mxu0 %v377_v50  ;;  %v437_v12 = vld [vmem:[#allocation11 + $0x2c0] sm:$0xff]  ;;  %v436_v13 = vld [vmem:[#allocation11 + $0x2b8] sm:$0xff]  ;;  %v434_v14 = vld [vmem:[#allocation11 + $0x2a8] sm:$0xff] }
  0x8e   :  { %299 = vmatpush1.msra.mxu1 %v240_v29  ;;  %475 = vmatpush1.msra.mxu0 %v376_v51  ;;  %v433_v15 = vld [vmem:[#allocation11 + $0x2a0] sm:$0xff]  ;;  %v431_v16 = vld [vmem:[#allocation11 + $0x290] sm:$0xff]  ;;  %v430_v17 = vld [vmem:[#allocation11 + $0x288] sm:$0xff] }
  0x8f   :  { %300 = vmatprep.subr.mxu1 %v239_v30  ;;  %476 = vmatprep.subr.mxu0 %v374_v53  ;;  %v428_v18 = vld [vmem:[#allocation11 + $0x278] sm:$0xff]  ;;  %v427_v19 = vld [vmem:[#allocation11 + $0x270] sm:$0xff]  ;;  %v425_v20 = vld [vmem:[#allocation11 + $0x260] sm:$0xff] }
  0x90   :  { %301 = vmatpush1.msra.mxu1 %v238_v31  ;;  %477 = vmatpush1.msra.mxu0 %v373_v54  ;;  %v424_v21 = vld [vmem:[#allocation11 + $0x258] sm:$0xff]  ;;  %v422_v22 = vld [vmem:[#allocation11 + $0x248] sm:$0xff]  ;;  %v421_v23 = vld [vmem:[#allocation11 + $0x240] sm:$0xff] }
  0x91   :  { %302 = vmatprep.subr.mxu1 %v237_v32  ;;  %478 = vmatprep.subr.mxu0 %v371_v55  ;;  %v419_v24 = vld [vmem:[#allocation11 + $0x230] sm:$0xff]  ;;  %v418_v25 = vld [vmem:[#allocation11 + $0x228] sm:$0xff]  ;;  %v416_v26 = vld [vmem:[#allocation11 + $0x218] sm:$0xff] }
  0x92   :  { %303 = vmatpush1.msra.mxu1 %v236_v33  ;;  %479 = vmatpush1.msra.mxu0 %v370_v56  ;;  %v415_v27 = vld [vmem:[#allocation11 + $0x210] sm:$0xff]  ;;  %v413_v28 = vld [vmem:[#allocation11 + $0x200] sm:$0xff]  ;;  %v412_v29 = vld [vmem:[#allocation11 + $0x1f8] sm:$0xff] }
  0x93   :  { %304 = vmatprep.subr.mxu1 %v235_v34  ;;  %480 = vmatprep.subr.mxu0 %v368_v57  ;;  %v410_v30 = vld [vmem:[#allocation11 + $0x1e8] sm:$0xff]  ;;  %v409_v31 = vld [vmem:[#allocation11 + $0x1e0] sm:$0xff]  ;;  %v1613_v32 = vld [vmem:[#allocation7] ss:$0 sm:$0xff] }
  0x94   :  { %305 = vmatpush1.msra.mxu1 %v234_v35  ;;  %481 = vmatpush1.msra.mxu0 %v367_v58  ;;  %v441_v38 = vld [vmem:[#allocation11 + $0x2e0] sm:$0xff]  ;;  %v438_v40 = vld [vmem:[#allocation11 + $0x2c8] sm:$0xff]  ;;  %v435_v42 = vld [vmem:[#allocation11 + $0x2b0] sm:$0xff] }
  0x95   :  { %306 = vmatprep.subr.mxu1 %v233_v36  ;;  %482 = vmatprep.subr.mxu0 %v365_v59  ;;  %v393_v39 = vld [vmem:[#allocation11 + $0x160] sm:$0xff]  ;;  %v390_v41 = vld [vmem:[#allocation11 + $0x148] sm:$0xff]  ;;  %v387_v43 = vld [vmem:[#allocation11 + $0x130] sm:$0xff] }
  0x96   :  { %307 = vmatpush1.msra.mxu1 %v232_v37  ;;  %483 = vmatpush1.msra.mxu0 %v364_v60  ;;  %v396_v37 = vld [vmem:[#allocation11 + $0x178] sm:$0xff]  ;;  %v429_v46 = vld [vmem:[#allocation11 + $0x280] sm:$0xff]  ;;  %v426_v48 = vld [vmem:[#allocation11 + $0x268] sm:$0xff] }
  0x97   :  { %1627 = vmatprep.subr.mxu1 %v444_v52  ;;  %484 = vmatprep.subr.mxu0 %v362_v61  ;;  %v432_v44 = vld [vmem:[#allocation11 + $0x298] sm:$0xff]  ;;  %v381_v47 = vld [vmem:[#allocation11 + $0x100] sm:$0xff]  ;;  %v378_v49 = vld [vmem:[#allocation11 + $0xe8] sm:$0xff] }
  0x98   :  { %485 = vmatpush1.msra.mxu0 %v361_v62  ;;  %v384_v45 = vld [vmem:[#allocation11 + $0x118] sm:$0xff]  ;;  %v423_v50 = vld [vmem:[#allocation11 + $0x250] sm:$0xff]  ;;  %v417_v54 = vld [vmem:[#allocation11 + $0x220] sm:$0xff] }
  0x99   :  { %486 = vmatprep.subr.mxu0 %v359_v63  ;;  %v375_v51 = vld [vmem:[#allocation11 + $0xd0] sm:$0xff]  ;;  %v420_v52 = vld [vmem:[#allocation11 + $0x238] sm:$0xff]  ;;  %v369_v55 = vld [vmem:[#allocation11 + $0xa0] sm:$0xff] }
  0x9a   :  { %487 = vmatpush1.msra.mxu0 %v358_v1  ;;  %v372_v53 = vld [vmem:[#allocation11 + $0xb8] sm:$0xff]  ;;  %v414_v56 = vld [vmem:[#allocation11 + $0x208] sm:$0xff]  ;;  %v411_v58 = vld [vmem:[#allocation11 + $0x1f0] sm:$0xff] }
  0x9b   :  { %488 = vmatprep.subr.mxu0 %v356_v2  ;;  %v366_v57 = vld [vmem:[#allocation11 + $0x88] sm:$0xff]  ;;  %v363_v59 = vld [vmem:[#allocation11 + $0x70] sm:$0xff]  ;;  %v408_v61 = vld [vmem:[#allocation11 + $0x1d8] sm:$0xff] }
  0x9c   :  { %489 = vmatpush1.msra.mxu0 %v355_v3  ;;  %v407_v60 = vld [vmem:[#allocation11 + $0x1d0] sm:$0xff]  ;;  %v406_v62 = vld [vmem:[#allocation11 + $0x1c8] sm:$0xff]  ;;  %v360_v63 = vld [vmem:[#allocation11 + $0x58] sm:$0xff] }
  0x9d   :  { %490 = vmatprep.subr.mxu0 %v353_v4  ;;  %v404_v1 = vld [vmem:[#allocation11 + $0x1b8] sm:$0xff]  ;;  %v405_v2 = vld [vmem:[#allocation11 + $0x1c0] sm:$0xff]  ;;  %v403_v3 = vld [vmem:[#allocation11 + $0x1b0] sm:$0xff] }
  0x9e   :  { %491 = vmatpush1.msra.mxu0 %v352_v5  ;;  %v357_v4 = vld [vmem:[#allocation11 + $0x40] sm:$0xff] }
  0x9f   :  { %492 = vmatprep.subr.mxu0 %v350_v6  ;;  %v401_v5 = vld [vmem:[#allocation11 + $0x1a0] sm:$0xff]  ;;  %v402_v6 = vld [vmem:[#allocation11 + $0x1a8] sm:$0xff] }
  0xa0   :  { %493 = vmatpush1.msra.mxu0 %v349_v7  ;;  %v400_v7 = vld [vmem:[#allocation11 + $0x198] sm:$0xff] }
  0xa1   :  { %494 = vmatprep.subr.mxu0 %v443_v8  ;;  %v354_v8 = vld [vmem:[#allocation11 + $0x28] sm:$0xff] }
  0xa2   :  { %495 = vmatpush2.msra.mxu0 %v442_v9  ;;  %v398_v9 = vld [vmem:[#allocation11 + $0x188] sm:$0xff] }
  0xa3   :  { %496 = vmatprep.subr.mxu0 %v440_v10  ;;  %v399_v10 = vld [vmem:[#allocation11 + $0x190] sm:$0xff] }
  0xa4   :  { %497 = vmatpush2.msra.mxu0 %v439_v11  ;;  %v397_v11 = vld [vmem:[#allocation11 + $0x180] sm:$0xff] }
  0xa5   :  { %498 = vmatprep.subr.mxu0 %v437_v12  ;;  %v351_v12 = vld [vmem:[#allocation11 + $0x10] sm:$0xff] }
  0xa6   :  { %499 = vmatpush2.msra.mxu0 %v436_v13  ;;  %v712_v13 = vld [vmem:[#allocation14 + $0x350] sm:$0xff] }
  0xa7   :  { %500 = vmatprep.subr.mxu0 %v434_v14  ;;  %v936_v14 = vld [vmem:[#allocation14 + $0xa50] sm:$0xff] }
  0xa8   :  { %501 = vmatpush2.msra.mxu0 %v433_v15  ;;  %v266_v15 = vlaneseq }
  0xa9   :  { %502 = vmatprep.subr.mxu0 %v431_v16 }
  0xaa   :  { %503 = vmatpush2.msra.mxu0 %v430_v17  ;;  %v2124_v16 = vshrl.u32 %v266_v15, 7  ;;  %v614_v15 = vld [vmem:[#allocation14 + $0x40] sm:$0xff] }
  0xab   :  { %504 = vmatprep.subr.mxu0 %v428_v18  ;;  %v264_v18 = vld [vmem:[#allocation10] sm:$0x3] }
  0xac   :  { %505 = vmatpush2.msra.mxu0 %v427_v19  ;;  %v2127_v17 = vsub.s32 0, %v2124_v16  ;;  %v2130_v19 = vsub.s32 1, %v2124_v16 }
  0xad   :  { %506 = vmatprep.subr.mxu0 %v425_v20 }
  0xae   :  { %507 = vmatpush2.msra.mxu0 %v424_v21  ;;  %v269_v20 = vrot.slane %v264_v18, %v2127_v17  ;;  %v273_v21 = vrot.slane %v264_v18, %v2130_v19  ;;  %v613_v18 = vld [vmem:[#allocation14 + $0x38] sm:$0xff] }
  0xaf   :  { %508 = vmatprep.subr.mxu0 %v422_v22 }
  0xb0   :  { %509 = vmatpush2.msra.mxu0 %v421_v23 }
  0xb1   :  { %510 = vmatprep.subr.mxu0 %v419_v24 }
  0xb2   :  { %511 = vmatpush2.msra.mxu0 %v418_v25 }
  0xb3   :  { %512 = vmatprep.subr.mxu0 %v416_v26 }
  0xb4   :  { %513 = vmatpush2.msra.mxu0 %v415_v27 }
  0xb5   :  { %514 = vmatprep.subr.mxu0 %v413_v28  ;;  %v711_v28 = vld [vmem:[#allocation14 + $0x348] sm:$0xff] }
  0xb6   :  { %515 = vmatpush2.msra.mxu0 %v412_v29  ;;  %v935_v29 = vld [vmem:[#allocation14 + $0xa48] sm:$0xff] }
  0xb7   :  { %516 = vmatprep.subr.mxu0 %v410_v30  ;;  %v705_v30 = vld [vmem:[#allocation14 + $0x318] sm:$0xff] }
  0xb8   :  { %517 = vmatpush2.msra.mxu0 %v409_v31  ;;  %v929_v31 = vld [vmem:[#allocation14 + $0xa18] sm:$0xff] }
  0xb9   :  { %518 = vmatprep.subr.mxu0 %v407_v60  ;;  %v655_v60 = vld [vmem:[#allocation14 + $0x188] sm:$0xff] }
  0xba   :  { %519 = vmatpush2.msra.mxu0 %v406_v62  ;;  %v649_v62 = vld [vmem:[#allocation14 + $0x158] sm:$0xff] }
  0xbb   :  { %520 = vmatprep.subr.mxu0 %v404_v1  ;;  %v648_v1 = vld [vmem:[#allocation14 + $0x150] sm:$0xff] }
  0xbc   :  { %521 = vmatpush2.msra.mxu0 %v403_v3  ;;  %v642_v3 = vld [vmem:[#allocation14 + $0x120] sm:$0xff] }
  0xbd   :  { %522 = vmatprep.subr.mxu0 %v401_v5  ;;  %v641_v5 = vld [vmem:[#allocation14 + $0x118] sm:$0xff] }
  0xbe   :  { %523 = vmatpush2.msra.mxu0 %v400_v7  ;;  %v635_v7 = vld [vmem:[#allocation14 + $0xe8] sm:$0xff] }
  0xbf   :  { %524 = vmatprep.subr.mxu0 %v398_v9  ;;  %v634_v9 = vld [vmem:[#allocation14 + $0xe0] sm:$0xff] }
  0xc0   :  { %525 = vmatpush2.msra.mxu0 %v397_v11  ;;  %v628_v11 = vld [vmem:[#allocation14 + $0xb0] sm:$0xff] }
  0xc1   :  { %1050 = vmatprep.subr.mxu0 %v936_v14  ;;  %v620_v14 = vld [vmem:[#allocation14 + $0x70] sm:$0xff] }
 0x13d   :  { %v227_v33 = vpop.f32.mrf.mxu0 }
 0x13e   :  { %v228_v34 = vadd.f32 %v1613_v32, %v227_v33  ;;  %v704_v32 = vld [vmem:[#allocation14 + $0x310] sm:$0xff] }
 0x13f   :  { %v1724_v35 = vpop.f32.mrf.mxu0  ;;  %v928_v33 = vld [vmem:[#allocation14 + $0xa10] sm:$0xff] }
 0x140   :  { %v231_v36 = vmax.f32 %v228_v34, 0.0  ;;  %v698_v34 = vld [vmem:[#allocation14 + $0x2e0] sm:$0xff] }
 0x141   :  { %v922_v35 = vld [vmem:[#allocation14 + $0x9e0] sm:$0xff] }
 0x142   :  { %341 = vmatmul.mubr.f32.vlgmr.msra.gmra.mxu1 %v231_v36  ;;  %v697_v36 = vld [vmem:[#allocation14 + $0x2d8] sm:$0xff] }
 0x143   :  { %1628 = vmatpush3.msra.mxu1 %v396_v37  ;;  %v921_v37 = vld [vmem:[#allocation14 + $0x9d8] sm:$0xff] }
 0x144   :  { %1629 = vmatprep.subr.mxu1 %v441_v38  ;;  %v691_v38 = vld [vmem:[#allocation14 + $0x2a8] sm:$0xff] }
 0x145   :  { %1630 = vmatpush3.msra.mxu1 %v393_v39  ;;  %v915_v39 = vld [vmem:[#allocation14 + $0x9a8] sm:$0xff] }
 0x146   :  { %1631 = vmatprep.subr.mxu1 %v438_v40  ;;  %v690_v40 = vld [vmem:[#allocation14 + $0x2a0] sm:$0xff] }
 0x147   :  { %1632 = vmatpush3.msra.mxu1 %v390_v41  ;;  %v914_v41 = vld [vmem:[#allocation14 + $0x9a0] sm:$0xff] }
 0x148   :  { %1633 = vmatprep.subr.mxu1 %v435_v42  ;;  %v684_v42 = vld [vmem:[#allocation14 + $0x270] sm:$0xff] }
 0x149   :  { %1634 = vmatpush3.msra.mxu1 %v387_v43  ;;  %v908_v43 = vld [vmem:[#allocation14 + $0x970] sm:$0xff] }
 0x14a   :  { %1635 = vmatprep.subr.mxu1 %v432_v44  ;;  %v683_v44 = vld [vmem:[#allocation14 + $0x268] sm:$0xff] }
 0x14b   :  { %1636 = vmatpush3.msra.mxu1 %v384_v45  ;;  %v907_v45 = vld [vmem:[#allocation14 + $0x968] sm:$0xff] }
 0x14c   :  { %1637 = vmatprep.subr.mxu1 %v429_v46  ;;  %v677_v46 = vld [vmem:[#allocation14 + $0x238] sm:$0xff] }
 0x14d   :  { %1638 = vmatpush3.msra.mxu1 %v381_v47  ;;  %v901_v47 = vld [vmem:[#allocation14 + $0x938] sm:$0xff] }
 0x14e   :  { %1639 = vmatprep.subr.mxu1 %v426_v48  ;;  %v676_v48 = vld [vmem:[#allocation14 + $0x230] sm:$0xff] }
 0x14f   :  { %1640 = vmatpush3.msra.mxu1 %v378_v49  ;;  %v900_v49 = vld [vmem:[#allocation14 + $0x930] sm:$0xff] }
 0x150   :  { %1641 = vmatprep.subr.mxu1 %v423_v50  ;;  %v670_v50 = vld [vmem:[#allocation14 + $0x200] sm:$0xff] }
 0x151   :  { %1642 = vmatpush3.msra.mxu1 %v375_v51  ;;  %v894_v51 = vld [vmem:[#allocation14 + $0x900] sm:$0xff] }
 0x152   :  { %1643 = vmatprep.subr.mxu1 %v420_v52  ;;  %v669_v52 = vld [vmem:[#allocation14 + $0x1f8] sm:$0xff] }
 0x153   :  { %1644 = vmatpush3.msra.mxu1 %v372_v53  ;;  %v893_v53 = vld [vmem:[#allocation14 + $0x8f8] sm:$0xff] }
 0x154   :  { %1645 = vmatprep.subr.mxu1 %v417_v54  ;;  %v663_v54 = vld [vmem:[#allocation14 + $0x1c8] sm:$0xff] }
 0x155   :  { %1646 = vmatpush3.msra.mxu1 %v369_v55  ;;  %v887_v55 = vld [vmem:[#allocation14 + $0x8c8] sm:$0xff] }
 0x156   :  { %1647 = vmatprep.subr.mxu1 %v414_v56  ;;  %v662_v56 = vld [vmem:[#allocation14 + $0x1c0] sm:$0xff] }
 0x157   :  { %1648 = vmatpush3.msra.mxu1 %v366_v57  ;;  %v886_v57 = vld [vmem:[#allocation14 + $0x8c0] sm:$0xff] }
 0x158   :  { %1649 = vmatprep.subr.mxu1 %v411_v58  ;;  %v656_v58 = vld [vmem:[#allocation14 + $0x190] sm:$0xff] }
 0x159   :  { %1650 = vmatpush3.msra.mxu1 %v363_v59  ;;  %v880_v59 = vld [vmem:[#allocation14 + $0x890] sm:$0xff] }
 0x15a   :  { %1651 = vmatprep.subr.mxu1 %v408_v61  ;;  %v879_v61 = vld [vmem:[#allocation14 + $0x888] sm:$0xff] }
 0x15b   :  { %1652 = vmatpush3.msra.mxu1 %v360_v63  ;;  %v873_v63 = vld [vmem:[#allocation14 + $0x858] sm:$0xff] }
 0x15c   :  { %1653 = vmatprep.subr.mxu1 %v405_v2  ;;  %v872_v2 = vld [vmem:[#allocation14 + $0x850] sm:$0xff] }
 0x15d   :  { %1654 = vmatpush3.msra.mxu1 %v357_v4  ;;  %v866_v4 = vld [vmem:[#allocation14 + $0x820] sm:$0xff] }
 0x15e   :  { %1655 = vmatprep.subr.mxu1 %v402_v6  ;;  %v865_v6 = vld [vmem:[#allocation14 + $0x818] sm:$0xff] }
 0x15f   :  { %1656 = vmatpush3.msra.mxu1 %v354_v8  ;;  %v859_v8 = vld [vmem:[#allocation14 + $0x7e8] sm:$0xff] }
 0x160   :  { %1657 = vmatprep.subr.mxu1 %v399_v10  ;;  %v858_v10 = vld [vmem:[#allocation14 + $0x7e0] sm:$0xff] }
 0x161   :  { %1658 = vmatpush3.msra.mxu1 %v351_v12  ;;  %v627_v12 = vld [vmem:[#allocation14 + $0xa8] sm:$0xff] }
 0x162   :  { %979 = vmatprep.subr.mxu1 %v712_v13  ;;  %v621_v13 = vld [vmem:[#allocation14 + $0x78] sm:$0xff] }
 0x202   :  { %v342_v22 = vpop.f32.mrf.mxu1 }
 0x203   :  { %v343_v23 = vadd.f32 %v342_v22, %v269_v20  ;;  %v607_v20 = vld [vmem:[#allocation14 + $0x8] sm:$0xff]  ;;  %v824_v22 = vld [vmem:[#allocation14 + $0x6d0] sm:$0xff] }
 0x204   :  { %v344_v24 = vpop.f32.mrf.mxu1 }
 0x205   :  { %v345_v25 = vadd.f32 %v344_v24, %v273_v21  ;;  %v347_v27 = vmax.f32 %v343_v23, 0.0  ;;  %v606_v21 = vld [vmem:[#allocation14] sm:$0xff]  ;;  %v823_v23 = vld [vmem:[#allocation14 + $0x6c8] sm:$0xff]  ;;  %v817_v24 = vld [vmem:[#allocation14 + $0x698] sm:$0xff] }
 0x207   :  { %v348_v26 = vmax.f32 %v345_v25, 0.0  ;;  %v816_v25 = vld [vmem:[#allocation14 + $0x690] sm:$0xff] }
 0x209   :  { %526 = vmatprep.mubr.f32.mxu0 %v348_v26  ;;  %597 = vmatprep.mubr.f32.mxu1 %v348_v26  ;;  %v810_v26 = vld [vmem:[#allocation14 + $0x660] sm:$0xff] }
 0x20a   :  { %527 = vmatmul.mubr.f32.vlgmr.msra.gmra.mxu0 %v347_v27  ;;  %598 = vmatmul.mubr.f32.vlgmr.msra.gmra.mxu1 %v347_v27  ;;  %v809_v27 = vld [vmem:[#allocation14 + $0x658] sm:$0xff] }
 0x20b   :  { %980 = vmatpush1.msra.mxu1 %v711_v28  ;;  %1051 = vmatpush1.msra.mxu0 %v935_v29  ;;  %v803_v28 = vld [vmem:[#allocation14 + $0x628] sm:$0xff]  ;;  %v802_v29 = vld [vmem:[#allocation14 + $0x620] sm:$0xff] }
 0x20c   :  { %981 = vmatprep.subr.mxu1 %v705_v30  ;;  %1052 = vmatprep.subr.mxu0 %v929_v31  ;;  %v796_v30 = vld [vmem:[#allocation14 + $0x5f0] sm:$0xff]  ;;  %v795_v31 = vld [vmem:[#allocation14 + $0x5e8] sm:$0xff] }
 0x20d   :  { %982 = vmatpush1.msra.mxu1 %v704_v32  ;;  %1053 = vmatpush1.msra.mxu0 %v928_v33  ;;  %v789_v32 = vld [vmem:[#allocation14 + $0x5b8] sm:$0xff]  ;;  %v788_v33 = vld [vmem:[#allocation14 + $0x5b0] sm:$0xff] }
 0x20e   :  { %983 = vmatprep.subr.mxu1 %v698_v34  ;;  %1054 = vmatprep.subr.mxu0 %v922_v35  ;;  %v782_v34 = vld [vmem:[#allocation14 + $0x580] sm:$0xff]  ;;  %v781_v35 = vld [vmem:[#allocation14 + $0x578] sm:$0xff] }
 0x20f   :  { %984 = vmatpush1.msra.mxu1 %v697_v36  ;;  %1055 = vmatpush1.msra.mxu0 %v921_v37  ;;  %v775_v36 = vld [vmem:[#allocation14 + $0x548] sm:$0xff]  ;;  %v774_v37 = vld [vmem:[#allocation14 + $0x540] sm:$0xff] }
 0x210   :  { %985 = vmatprep.subr.mxu1 %v691_v38  ;;  %1056 = vmatprep.subr.mxu0 %v915_v39  ;;  %v768_v38 = vld [vmem:[#allocation14 + $0x510] sm:$0xff]  ;;  %v767_v39 = vld [vmem:[#allocation14 + $0x508] sm:$0xff] }
 0x211   :  { %986 = vmatpush1.msra.mxu1 %v690_v40  ;;  %1057 = vmatpush1.msra.mxu0 %v914_v41  ;;  %v761_v40 = vld [vmem:[#allocation14 + $0x4d8] sm:$0xff]  ;;  %v760_v41 = vld [vmem:[#allocation14 + $0x4d0] sm:$0xff] }
 0x212   :  { %987 = vmatprep.subr.mxu1 %v684_v42  ;;  %1058 = vmatprep.subr.mxu0 %v908_v43  ;;  %v754_v42 = vld [vmem:[#allocation14 + $0x4a0] sm:$0xff]  ;;  %v753_v43 = vld [vmem:[#allocation14 + $0x498] sm:$0xff] }
 0x213   :  { %988 = vmatpush1.msra.mxu1 %v683_v44  ;;  %1059 = vmatpush1.msra.mxu0 %v907_v45  ;;  %v747_v44 = vld [vmem:[#allocation14 + $0x468] sm:$0xff]  ;;  %v746_v45 = vld [vmem:[#allocation14 + $0x460] sm:$0xff] }
 0x214   :  { %989 = vmatprep.subr.mxu1 %v677_v46  ;;  %1060 = vmatprep.subr.mxu0 %v901_v47  ;;  %v740_v46 = vld [vmem:[#allocation14 + $0x430] sm:$0xff]  ;;  %v739_v47 = vld [vmem:[#allocation14 + $0x428] sm:$0xff] }
 0x215   :  { %990 = vmatpush1.msra.mxu1 %v676_v48  ;;  %1061 = vmatpush1.msra.mxu0 %v900_v49  ;;  %v852_v48 = vld [vmem:[#allocation14 + $0x7b0] sm:$0xff]  ;;  %v733_v49 = vld [vmem:[#allocation14 + $0x3f8] sm:$0xff] }
 0x216   :  { %991 = vmatprep.subr.mxu1 %v670_v50  ;;  %1062 = vmatprep.subr.mxu0 %v894_v51  ;;  %v851_v50 = vld [vmem:[#allocation14 + $0x7a8] sm:$0xff]  ;;  %v732_v51 = vld [vmem:[#allocation14 + $0x3f0] sm:$0xff] }
 0x217   :  { %992 = vmatpush1.msra.mxu1 %v669_v52  ;;  %1063 = vmatpush1.msra.mxu0 %v893_v53  ;;  %v845_v52 = vld [vmem:[#allocation14 + $0x778] sm:$0xff]  ;;  %v726_v53 = vld [vmem:[#allocation14 + $0x3c0] sm:$0xff] }
 0x218   :  { %993 = vmatprep.subr.mxu1 %v663_v54  ;;  %1064 = vmatprep.subr.mxu0 %v887_v55  ;;  %v844_v54 = vld [vmem:[#allocation14 + $0x770] sm:$0xff]  ;;  %v725_v55 = vld [vmem:[#allocation14 + $0x3b8] sm:$0xff] }
 0x219   :  { %994 = vmatpush1.msra.mxu1 %v662_v56  ;;  %1065 = vmatpush1.msra.mxu0 %v886_v57  ;;  %v838_v56 = vld [vmem:[#allocation14 + $0x740] sm:$0xff]  ;;  %v719_v57 = vld [vmem:[#allocation14 + $0x388] sm:$0xff] }
 0x21a   :  { %995 = vmatprep.subr.mxu1 %v656_v58  ;;  %1066 = vmatprep.subr.mxu0 %v880_v59  ;;  %v837_v58 = vld [vmem:[#allocation14 + $0x738] sm:$0xff]  ;;  %v718_v59 = vld [vmem:[#allocation14 + $0x380] sm:$0xff] }
 0x21b   :  { %996 = vmatpush1.msra.mxu1 %v655_v60  ;;  %1067 = vmatpush1.msra.mxu0 %v879_v61  ;;  %v831_v60 = vld [vmem:[#allocation14 + $0x708] sm:$0xff]  ;;  %v830_v61 = vld [vmem:[#allocation14 + $0x700] sm:$0xff] }
 0x21c   :  { %997 = vmatprep.subr.mxu1 %v649_v62  ;;  %1068 = vmatprep.subr.mxu0 %v873_v63  ;;  %v938_v62 = vld [vmem:[#allocation14 + $0xa60] sm:$0xff] }
 0x21d   :  { %998 = vmatpush1.msra.mxu1 %v648_v1  ;;  %1069 = vmatpush1.msra.mxu0 %v872_v2  ;;  %v714_v63 = vld [vmem:[#allocation14 + $0x360] sm:$0xff]  ;;  %v445_v1 = vld [vmem:[#allocation13] sm:$0x7]  ;;  %v457_v2 = vsub.s32 2, %v2124_v16 }
 0x21e   :  { %999 = vmatprep.subr.mxu1 %v642_v3  ;;  %1070 = vmatprep.subr.mxu0 %v866_v4  ;;  %v450_v3 = vrot.slane %v445_v1, %v2127_v17  ;;  %v454_v4 = vrot.slane %v445_v1, %v2130_v19 }
 0x21f   :  { %1000 = vmatpush1.msra.mxu1 %v641_v5  ;;  %1071 = vmatpush1.msra.mxu0 %v865_v6 }
 0x220   :  { %1001 = vmatprep.subr.mxu1 %v635_v7  ;;  %1072 = vmatprep.subr.mxu0 %v859_v8  ;;  %v458_v7 = vrot.slane %v445_v1, %v457_v2  ;;  %v860_v1 = vld [vmem:[#allocation14 + $0x7f0] sm:$0xff] }
 0x221   :  { %1002 = vmatpush1.msra.mxu1 %v634_v9  ;;  %1073 = vmatpush1.msra.mxu0 %v858_v10 }
 0x222   :  { %1003 = vmatprep.subr.mxu1 %v628_v11  ;;  %1114 = vmatprep.mubr.f32.mxu0 %v2037_v0 }
 0x223   :  { %1004 = vmatpush1.msra.mxu1 %v627_v12  ;;  %1074 = vmatprep.subr.mxu0 %v852_v48  ;;  %v888_v48 = vld [vmem:[#allocation14 + $0x8d0] sm:$0xff] }
 0x224   :  { %1005 = vmatprep.subr.mxu1 %v621_v13  ;;  %1075 = vmatpush1.msra.mxu0 %v851_v50  ;;  %v882_v50 = vld [vmem:[#allocation14 + $0x8a0] sm:$0xff] }
 0x225   :  { %1006 = vmatpush1.msra.mxu1 %v620_v14  ;;  %1076 = vmatprep.subr.mxu0 %v845_v52  ;;  %v881_v52 = vld [vmem:[#allocation14 + $0x898] sm:$0xff] }
 0x226   :  { %1007 = vmatprep.subr.mxu1 %v614_v15  ;;  %1077 = vmatpush1.msra.mxu0 %v844_v54  ;;  %v875_v54 = vld [vmem:[#allocation14 + $0x868] sm:$0xff] }
 0x227   :  { %1008 = vmatpush1.msra.mxu1 %v613_v18  ;;  %1078 = vmatprep.subr.mxu0 %v838_v56  ;;  %v937_v18 = vld [vmem:[#allocation14 + $0xa58] sm:$0xff]  ;;  %v874_v56 = vld [vmem:[#allocation14 + $0x860] sm:$0xff] }
 0x228   :  { %1009 = vmatprep.subr.mxu1 %v607_v20  ;;  %1079 = vmatpush1.msra.mxu0 %v837_v58  ;;  %v868_v58 = vld [vmem:[#allocation14 + $0x830] sm:$0xff] }
 0x229   :  { %1010 = vmatpush1.msra.mxu1 %v606_v21  ;;  %1080 = vmatprep.subr.mxu0 %v831_v60  ;;  %v713_v21 = vld [vmem:[#allocation14 + $0x358] sm:$0xff]  ;;  %v867_v60 = vld [vmem:[#allocation14 + $0x828] sm:$0xff] }
 0x22a   :  { %1011 = vmatprep.subr.mxu1 %v824_v22  ;;  %1081 = vmatpush1.msra.mxu0 %v830_v61  ;;  %v931_v22 = vld [vmem:[#allocation14 + $0xa28] sm:$0xff] }
 0x22b   :  { %1012 = vmatpush2.msra.mxu1 %v823_v23  ;;  %1121 = vmatprep.subr.mxu0 %v714_v63  ;;  %v707_v23 = vld [vmem:[#allocation14 + $0x328] sm:$0xff]  ;;  %v637_v63 = vld [vmem:[#allocation14 + $0xf8] sm:$0xff] }
 0x22c   :  { %1013 = vmatprep.subr.mxu1 %v817_v24  ;;  %v930_v24 = vld [vmem:[#allocation14 + $0xa20] sm:$0xff]  ;;  %v643_v61 = vld [vmem:[#allocation14 + $0x128] sm:$0xff] }
 0x22d   :  { %1014 = vmatpush2.msra.mxu1 %v816_v25  ;;  %v706_v25 = vld [vmem:[#allocation14 + $0x320] sm:$0xff] }
 0x22e   :  { %1015 = vmatprep.subr.mxu1 %v810_v26  ;;  %v924_v26 = vld [vmem:[#allocation14 + $0x9f0] sm:$0xff] }
 0x22f   :  { %1016 = vmatpush2.msra.mxu1 %v809_v27  ;;  %v700_v27 = vld [vmem:[#allocation14 + $0x2f0] sm:$0xff] }
 0x230   :  { %1017 = vmatprep.subr.mxu1 %v803_v28  ;;  %v923_v28 = vld [vmem:[#allocation14 + $0x9e8] sm:$0xff] }
 0x231   :  { %1018 = vmatpush2.msra.mxu1 %v802_v29  ;;  %v699_v29 = vld [vmem:[#allocation14 + $0x2e8] sm:$0xff] }
 0x232   :  { %1019 = vmatprep.subr.mxu1 %v796_v30  ;;  %v917_v30 = vld [vmem:[#allocation14 + $0x9b8] sm:$0xff] }
 0x233   :  { %1020 = vmatpush2.msra.mxu1 %v795_v31  ;;  %v693_v31 = vld [vmem:[#allocation14 + $0x2b8] sm:$0xff] }
 0x234   :  { %1021 = vmatprep.subr.mxu1 %v789_v32  ;;  %v916_v32 = vld [vmem:[#allocation14 + $0x9b0] sm:$0xff] }
 0x235   :  { %1022 = vmatpush2.msra.mxu1 %v788_v33  ;;  %v692_v33 = vld [vmem:[#allocation14 + $0x2b0] sm:$0xff] }
 0x236   :  { %1023 = vmatprep.subr.mxu1 %v782_v34  ;;  %v910_v34 = vld [vmem:[#allocation14 + $0x980] sm:$0xff] }
 0x237   :  { %1024 = vmatpush2.msra.mxu1 %v781_v35  ;;  %v686_v35 = vld [vmem:[#allocation14 + $0x280] sm:$0xff] }
 0x238   :  { %1025 = vmatprep.subr.mxu1 %v775_v36  ;;  %v909_v36 = vld [vmem:[#allocation14 + $0x978] sm:$0xff] }
 0x239   :  { %1026 = vmatpush2.msra.mxu1 %v774_v37  ;;  %v685_v37 = vld [vmem:[#allocation14 + $0x278] sm:$0xff] }
 0x23a   :  { %1027 = vmatprep.subr.mxu1 %v768_v38  ;;  %v903_v38 = vld [vmem:[#allocation14 + $0x948] sm:$0xff] }
 0x23b   :  { %1028 = vmatpush2.msra.mxu1 %v767_v39  ;;  %v679_v39 = vld [vmem:[#allocation14 + $0x248] sm:$0xff] }
 0x23c   :  { %1029 = vmatprep.subr.mxu1 %v761_v40  ;;  %v902_v40 = vld [vmem:[#allocation14 + $0x940] sm:$0xff] }
 0x23d   :  { %1030 = vmatpush2.msra.mxu1 %v760_v41  ;;  %v678_v41 = vld [vmem:[#allocation14 + $0x240] sm:$0xff] }
 0x23e   :  { %1031 = vmatprep.subr.mxu1 %v754_v42  ;;  %v896_v42 = vld [vmem:[#allocation14 + $0x910] sm:$0xff] }
 0x23f   :  { %1032 = vmatpush2.msra.mxu1 %v753_v43  ;;  %v672_v43 = vld [vmem:[#allocation14 + $0x210] sm:$0xff] }
 0x240   :  { %1033 = vmatprep.subr.mxu1 %v747_v44  ;;  %v895_v44 = vld [vmem:[#allocation14 + $0x908] sm:$0xff] }
 0x241   :  { %1034 = vmatpush2.msra.mxu1 %v746_v45  ;;  %v671_v45 = vld [vmem:[#allocation14 + $0x208] sm:$0xff] }
 0x242   :  { %1035 = vmatprep.subr.mxu1 %v740_v46  ;;  %v889_v46 = vld [vmem:[#allocation14 + $0x8d8] sm:$0xff] }
 0x243   :  { %1036 = vmatpush2.msra.mxu1 %v739_v47  ;;  %v665_v47 = vld [vmem:[#allocation14 + $0x1d8] sm:$0xff] }
 0x244   :  { %1037 = vmatprep.subr.mxu1 %v733_v49  ;;  %v664_v49 = vld [vmem:[#allocation14 + $0x1d0] sm:$0xff] }
 0x245   :  { %1038 = vmatpush2.msra.mxu1 %v732_v51  ;;  %v658_v51 = vld [vmem:[#allocation14 + $0x1a0] sm:$0xff] }
 0x246   :  { %1039 = vmatprep.subr.mxu1 %v726_v53  ;;  %v657_v53 = vld [vmem:[#allocation14 + $0x198] sm:$0xff] }
 0x247   :  { %1040 = vmatpush2.msra.mxu1 %v725_v55  ;;  %v651_v55 = vld [vmem:[#allocation14 + $0x168] sm:$0xff] }
 0x248   :  { %1041 = vmatprep.subr.mxu1 %v719_v57  ;;  %v650_v57 = vld [vmem:[#allocation14 + $0x160] sm:$0xff] }
 0x249   :  { %1042 = vmatpush2.msra.mxu1 %v718_v59  ;;  %v644_v59 = vld [vmem:[#allocation14 + $0x130] sm:$0xff] }
 0x24a   :  { %1192 = vmatprep.subr.mxu1 %v938_v62  ;;  %v861_v62 = vld [vmem:[#allocation14 + $0x7f8] sm:$0xff] }
 0x2ca   :  { %v528_v5 = vpop.f32.mrf.mxu0  ;;  %v1659_v6 = vpop.f32.mrf.mxu1 }
 0x2cb   :  { %v529_v8 = vadd.f32 %v528_v5, %v450_v3  ;;  %v636_v3 = vld [vmem:[#allocation14 + $0xf0] sm:$0xff]  ;;  %v630_v5 = vld [vmem:[#allocation14 + $0xc0] sm:$0xff] }
 0x2cc   :  { %v530_v9 = vpop.f32.mrf.mxu0  ;;  %v1660_v10 = vpop.f32.mrf.mxu1 }
 0x2cd   :  { %v531_v11 = vadd.f32 %v530_v9, %v454_v4  ;;  %v1661_v12 = vadd.f32 %v1660_v10, %v1659_v6  ;;  %v2142_v15 = vmax.f32 %v529_v8, 0.0  ;;  %v854_v4 = vld [vmem:[#allocation14 + $0x7c0] sm:$0xff]  ;;  %v853_v6 = vld [vmem:[#allocation14 + $0x7b8] sm:$0xff]  ;;  %v847_v8 = vld [vmem:[#allocation14 + $0x788] sm:$0xff] }
 0x2ce   :  { %v623_v9 = vld [vmem:[#allocation14 + $0x88] sm:$0xff]  ;;  %v846_v10 = vld [vmem:[#allocation14 + $0x780] sm:$0xff] }
 0x2cf   :  { %v2140_v13 = vmax.f32 %v531_v11, 0.0  ;;  %v600_v14 = vadd.f32 %v1661_v12, %v458_v7  ;;  %v629_v7 = vld [vmem:[#allocation14 + $0xb8] sm:$0xff]  ;;  %v622_v11 = vld [vmem:[#allocation14 + $0x80] sm:$0xff]  ;;  %v840_v12 = vld [vmem:[#allocation14 + $0x750] sm:$0xff] }
 0x2d1   :  { %v2144_v20 = vmax.f32 %v600_v14, 0.0  ;;  %1043 = vmatprep.mubr.f32.mxu1 %v2140_v13  ;;  %v616_v14 = vld [vmem:[#allocation14 + $0x50] sm:$0xff] }
 0x2d2   :  { %1044 = vmatmul.mubr.f32.vlgmr.msra.gmra.mxu1 %v2142_v15 }
 0x2d3   :  { %1193 = vmatpush1.msra.mxu1 %v937_v18  ;;  %1115 = vmatmul.mubr.f32.vlgmr.msra.gmra.mxu0 %v2144_v20  ;;  %v839_v18 = vld [vmem:[#allocation14 + $0x748] sm:$0xff] }
 0x2d4   :  { %1122 = vmatpush1.msra.mxu0 %v713_v21  ;;  %1194 = vmatprep.subr.mxu1 %v931_v22  ;;  %v615_v21 = vld [vmem:[#allocation14 + $0x48] sm:$0xff]  ;;  %v833_v22 = vld [vmem:[#allocation14 + $0x718] sm:$0xff] }
 0x2d5   :  { %1123 = vmatprep.subr.mxu0 %v707_v23  ;;  %1185 = vmatprep.mubr.f32.mxu0 %v2140_v13  ;;  %v609_v23 = vld [vmem:[#allocation14 + $0x18] sm:$0xff] }
 0x2d6   :  { %1195 = vmatpush1.msra.mxu1 %v930_v24  ;;  %1124 = vmatpush1.msra.mxu0 %v706_v25  ;;  %v832_v24 = vld [vmem:[#allocation14 + $0x710] sm:$0xff] }
 0x2d7   :  { %1196 = vmatprep.subr.mxu1 %v924_v26  ;;  %1125 = vmatprep.subr.mxu0 %v700_v27  ;;  %v608_v25 = vld [vmem:[#allocation14 + $0x10] sm:$0xff]  ;;  %v826_v27 = vld [vmem:[#allocation14 + $0x6e0] sm:$0xff] }
 0x2d8   :  { %1197 = vmatpush1.msra.mxu1 %v923_v28  ;;  %1126 = vmatpush1.msra.mxu0 %v699_v29  ;;  %v716_v26 = vld [vmem:[#allocation14 + $0x370] sm:$0xff]  ;;  %v715_v28 = vld [vmem:[#allocation14 + $0x368] sm:$0xff]  ;;  %v825_v29 = vld [vmem:[#allocation14 + $0x6d8] sm:$0xff] }
 0x2d9   :  { %1198 = vmatprep.subr.mxu1 %v917_v30  ;;  %1127 = vmatprep.subr.mxu0 %v693_v31  ;;  %v709_v30 = vld [vmem:[#allocation14 + $0x338] sm:$0xff]  ;;  %v819_v31 = vld [vmem:[#allocation14 + $0x6a8] sm:$0xff] }
 0x2da   :  { %1199 = vmatpush1.msra.mxu1 %v916_v32  ;;  %1128 = vmatpush1.msra.mxu0 %v692_v33  ;;  %v708_v32 = vld [vmem:[#allocation14 + $0x330] sm:$0xff]  ;;  %v818_v33 = vld [vmem:[#allocation14 + $0x6a0] sm:$0xff] }
 0x2db   :  { %1200 = vmatprep.subr.mxu1 %v910_v34  ;;  %1129 = vmatprep.subr.mxu0 %v686_v35  ;;  %v702_v34 = vld [vmem:[#allocation14 + $0x300] sm:$0xff]  ;;  %v812_v35 = vld [vmem:[#allocation14 + $0x670] sm:$0xff] }
 0x2dc   :  { %1201 = vmatpush1.msra.mxu1 %v909_v36  ;;  %1130 = vmatpush1.msra.mxu0 %v685_v37  ;;  %v701_v36 = vld [vmem:[#allocation14 + $0x2f8] sm:$0xff]  ;;  %v811_v37 = vld [vmem:[#allocation14 + $0x668] sm:$0xff] }
 0x2dd   :  { %1202 = vmatprep.subr.mxu1 %v903_v38  ;;  %1131 = vmatprep.subr.mxu0 %v679_v39  ;;  %v695_v38 = vld [vmem:[#allocation14 + $0x2c8] sm:$0xff]  ;;  %v805_v39 = vld [vmem:[#allocation14 + $0x638] sm:$0xff] }
 0x2de   :  { %1203 = vmatpush1.msra.mxu1 %v902_v40  ;;  %1132 = vmatpush1.msra.mxu0 %v678_v41  ;;  %v694_v40 = vld [vmem:[#allocation14 + $0x2c0] sm:$0xff]  ;;  %v804_v41 = vld [vmem:[#allocation14 + $0x630] sm:$0xff] }
 0x2df   :  { %1204 = vmatprep.subr.mxu1 %v896_v42  ;;  %1133 = vmatprep.subr.mxu0 %v672_v43  ;;  %v688_v42 = vld [vmem:[#allocation14 + $0x290] sm:$0xff]  ;;  %v798_v43 = vld [vmem:[#allocation14 + $0x600] sm:$0xff] }
 0x2e0   :  { %1205 = vmatpush1.msra.mxu1 %v895_v44  ;;  %1134 = vmatpush1.msra.mxu0 %v671_v45  ;;  %v687_v44 = vld [vmem:[#allocation14 + $0x288] sm:$0xff]  ;;  %v797_v45 = vld [vmem:[#allocation14 + $0x5f8] sm:$0xff] }
 0x2e1   :  { %1206 = vmatprep.subr.mxu1 %v889_v46  ;;  %1135 = vmatprep.subr.mxu0 %v665_v47  ;;  %v681_v46 = vld [vmem:[#allocation14 + $0x258] sm:$0xff]  ;;  %v791_v47 = vld [vmem:[#allocation14 + $0x5c8] sm:$0xff] }
 0x2e2   :  { %1207 = vmatpush1.msra.mxu1 %v888_v48  ;;  %1136 = vmatpush1.msra.mxu0 %v664_v49  ;;  %v680_v48 = vld [vmem:[#allocation14 + $0x250] sm:$0xff]  ;;  %v790_v49 = vld [vmem:[#allocation14 + $0x5c0] sm:$0xff] }
 0x2e3   :  { %1208 = vmatprep.subr.mxu1 %v882_v50  ;;  %1137 = vmatprep.subr.mxu0 %v658_v51  ;;  %v674_v50 = vld [vmem:[#allocation14 + $0x220] sm:$0xff]  ;;  %v784_v51 = vld [vmem:[#allocation14 + $0x590] sm:$0xff] }
 0x2e4   :  { %1209 = vmatpush1.msra.mxu1 %v881_v52  ;;  %1138 = vmatpush1.msra.mxu0 %v657_v53  ;;  %v673_v52 = vld [vmem:[#allocation14 + $0x218] sm:$0xff]  ;;  %v783_v53 = vld [vmem:[#allocation14 + $0x588] sm:$0xff] }
 0x2e5   :  { %1210 = vmatprep.subr.mxu1 %v875_v54  ;;  %1139 = vmatprep.subr.mxu0 %v651_v55  ;;  %v667_v54 = vld [vmem:[#allocation14 + $0x1e8] sm:$0xff]  ;;  %v777_v55 = vld [vmem:[#allocation14 + $0x558] sm:$0xff] }
 0x2e6   :  { %1211 = vmatpush1.msra.mxu1 %v874_v56  ;;  %1140 = vmatpush1.msra.mxu0 %v650_v57  ;;  %v666_v56 = vld [vmem:[#allocation14 + $0x1e0] sm:$0xff]  ;;  %v776_v57 = vld [vmem:[#allocation14 + $0x550] sm:$0xff] }
 0x2e7   :  { %1212 = vmatprep.subr.mxu1 %v868_v58  ;;  %1141 = vmatprep.subr.mxu0 %v644_v59  ;;  %v660_v58 = vld [vmem:[#allocation14 + $0x1b0] sm:$0xff]  ;;  %v770_v59 = vld [vmem:[#allocation14 + $0x520] sm:$0xff] }
 0x2e8   :  { %1213 = vmatpush1.msra.mxu1 %v867_v60  ;;  %1142 = vmatpush1.msra.mxu0 %v643_v61  ;;  %v659_v60 = vld [vmem:[#allocation14 + $0x1a8] sm:$0xff]  ;;  %v769_v61 = vld [vmem:[#allocation14 + $0x518] sm:$0xff] }
 0x2e9   :  { %1214 = vmatprep.subr.mxu1 %v861_v62  ;;  %1143 = vmatprep.subr.mxu0 %v637_v63  ;;  %v653_v62 = vld [vmem:[#allocation14 + $0x178] sm:$0xff]  ;;  %v763_v63 = vld [vmem:[#allocation14 + $0x4e8] sm:$0xff] }
 0x2ea   :  { %1215 = vmatpush1.msra.mxu1 %v860_v1  ;;  %1144 = vmatpush1.msra.mxu0 %v636_v3  ;;  %v652_v1 = vld [vmem:[#allocation14 + $0x170] sm:$0xff]  ;;  %v762_v3 = vld [vmem:[#allocation14 + $0x4e0] sm:$0xff] }
 0x2eb   :  { %1216 = vmatprep.subr.mxu1 %v854_v4  ;;  %1145 = vmatprep.subr.mxu0 %v630_v5  ;;  %v646_v4 = vld [vmem:[#allocation14 + $0x140] sm:$0xff]  ;;  %v756_v5 = vld [vmem:[#allocation14 + $0x4b0] sm:$0xff] }
 0x2ec   :  { %1217 = vmatpush1.msra.mxu1 %v853_v6  ;;  %1146 = vmatpush1.msra.mxu0 %v629_v7  ;;  %v645_v6 = vld [vmem:[#allocation14 + $0x138] sm:$0xff]  ;;  %v755_v7 = vld [vmem:[#allocation14 + $0x4a8] sm:$0xff] }
 0x2ed   :  { %1218 = vmatprep.subr.mxu1 %v847_v8  ;;  %1147 = vmatprep.subr.mxu0 %v623_v9  ;;  %v639_v8 = vld [vmem:[#allocation14 + $0x108] sm:$0xff]  ;;  %v749_v9 = vld [vmem:[#allocation14 + $0x478] sm:$0xff] }
 0x2ee   :  { %1219 = vmatpush1.msra.mxu1 %v846_v10  ;;  %1148 = vmatpush1.msra.mxu0 %v622_v11  ;;  %v638_v10 = vld [vmem:[#allocation14 + $0x100] sm:$0xff]  ;;  %v748_v11 = vld [vmem:[#allocation14 + $0x470] sm:$0xff] }
 0x2ef   :  { %1220 = vmatprep.subr.mxu1 %v840_v12  ;;  %1149 = vmatprep.subr.mxu0 %v616_v14  ;;  %v632_v12 = vld [vmem:[#allocation14 + $0xd0] sm:$0xff]  ;;  %v742_v14 = vld [vmem:[#allocation14 + $0x440] sm:$0xff] }
 0x2f0   :  { %1221 = vmatpush1.msra.mxu1 %v839_v18  ;;  %1150 = vmatpush1.msra.mxu0 %v615_v21  ;;  %v631_v18 = vld [vmem:[#allocation14 + $0xc8] sm:$0xff]  ;;  %v741_v21 = vld [vmem:[#allocation14 + $0x438] sm:$0xff] }
 0x2f1   :  { %1222 = vmatprep.subr.mxu1 %v833_v22  ;;  %1151 = vmatprep.subr.mxu0 %v609_v23  ;;  %v625_v22 = vld [vmem:[#allocation14 + $0x98] sm:$0xff]  ;;  %v735_v23 = vld [vmem:[#allocation14 + $0x408] sm:$0xff] }
 0x2f2   :  { %1223 = vmatpush1.msra.mxu1 %v832_v24  ;;  %1256 = vmatprep.mubr.f32.mxu1 %v2037_v0  ;;  %v624_v24 = vld [vmem:[#allocation14 + $0x90] sm:$0xff] }
 0x2f3   :  { %1152 = vmatpush1.msra.mxu0 %v608_v25  ;;  %1257 = vmatmul.mubr.f32.vlgmr.msra.gmra.mxu1 %v2144_v20  ;;  %v734_v25 = vld [vmem:[#allocation14 + $0x400] sm:$0xff] }
 0x2f4   :  { %1263 = vmatprep.subr.mxu1 %v716_v26  ;;  %1153 = vmatprep.subr.mxu0 %v826_v27  ;;  %v618_v26 = vld [vmem:[#allocation14 + $0x60] sm:$0xff]  ;;  %v728_v27 = vld [vmem:[#allocation14 + $0x3d0] sm:$0xff] }
 0x2f5   :  { %1264 = vmatpush1.msra.mxu1 %v715_v28  ;;  %1327 = vmatprep.mubr.f32.mxu1 %v2140_v13  ;;  %v617_v28 = vld [vmem:[#allocation14 + $0x58] sm:$0xff] }
 0x2f6   :  { %1154 = vmatpush2.msra.mxu0 %v825_v29  ;;  %1265 = vmatprep.subr.mxu1 %v709_v30  ;;  %v727_v29 = vld [vmem:[#allocation14 + $0x3c8] sm:$0xff] }
 0x2f7   :  { %1155 = vmatprep.subr.mxu0 %v819_v31  ;;  %1266 = vmatpush1.msra.mxu1 %v708_v32  ;;  %v611_v30 = vld [vmem:[#allocation14 + $0x28] sm:$0xff]  ;;  %v721_v31 = vld [vmem:[#allocation14 + $0x398] sm:$0xff]  ;;  %v610_v32 = vld [vmem:[#allocation14 + $0x20] sm:$0xff] }
 0x2f8   :  { %1156 = vmatpush2.msra.mxu0 %v818_v33  ;;  %1267 = vmatprep.subr.mxu1 %v702_v34  ;;  %v720_v33 = vld [vmem:[#allocation14 + $0x390] sm:$0xff] }
 0x2f9   :  { %1157 = vmatprep.subr.mxu0 %v812_v35  ;;  %1268 = vmatpush1.msra.mxu1 %v701_v36  ;;  %v828_v34 = vld [vmem:[#allocation14 + $0x6f0] sm:$0xff]  ;;  %v827_v35 = vld [vmem:[#allocation14 + $0x6e8] sm:$0xff] }
 0x2fa   :  { %1158 = vmatpush2.msra.mxu0 %v811_v37  ;;  %1269 = vmatprep.subr.mxu1 %v695_v38  ;;  %v940_v36 = vld [vmem:[#allocation14 + $0xa70] sm:$0xff]  ;;  %v821_v37 = vld [vmem:[#allocation14 + $0x6b8] sm:$0xff]  ;;  %v939_v38 = vld [vmem:[#allocation14 + $0xa68] sm:$0xff] }
 0x2fb   :  { %1159 = vmatprep.subr.mxu0 %v805_v39  ;;  %1270 = vmatpush1.msra.mxu1 %v694_v40  ;;  %v820_v39 = vld [vmem:[#allocation14 + $0x6b0] sm:$0xff]  ;;  %v933_v40 = vld [vmem:[#allocation14 + $0xa38] sm:$0xff] }
 0x2fc   :  { %1160 = vmatpush2.msra.mxu0 %v804_v41  ;;  %1271 = vmatprep.subr.mxu1 %v688_v42  ;;  %v814_v41 = vld [vmem:[#allocation14 + $0x680] sm:$0xff]  ;;  %v932_v42 = vld [vmem:[#allocation14 + $0xa30] sm:$0xff] }
 0x2fd   :  { %1161 = vmatprep.subr.mxu0 %v798_v43  ;;  %1272 = vmatpush1.msra.mxu1 %v687_v44  ;;  %v813_v43 = vld [vmem:[#allocation14 + $0x678] sm:$0xff]  ;;  %v926_v44 = vld [vmem:[#allocation14 + $0xa00] sm:$0xff] }
 0x2fe   :  { %1162 = vmatpush2.msra.mxu0 %v797_v45  ;;  %1273 = vmatprep.subr.mxu1 %v681_v46  ;;  %v807_v45 = vld [vmem:[#allocation14 + $0x648] sm:$0xff]  ;;  %v925_v46 = vld [vmem:[#allocation14 + $0x9f8] sm:$0xff] }
 0x2ff   :  { %1163 = vmatprep.subr.mxu0 %v791_v47  ;;  %1274 = vmatpush1.msra.mxu1 %v680_v48  ;;  %v806_v47 = vld [vmem:[#allocation14 + $0x640] sm:$0xff]  ;;  %v919_v48 = vld [vmem:[#allocation14 + $0x9c8] sm:$0xff] }
 0x300   :  { %1164 = vmatpush2.msra.mxu0 %v790_v49  ;;  %1275 = vmatprep.subr.mxu1 %v674_v50  ;;  %v800_v49 = vld [vmem:[#allocation14 + $0x610] sm:$0xff]  ;;  %v918_v50 = vld [vmem:[#allocation14 + $0x9c0] sm:$0xff] }
 0x301   :  { %1165 = vmatprep.subr.mxu0 %v784_v51  ;;  %1276 = vmatpush1.msra.mxu1 %v673_v52  ;;  %v799_v51 = vld [vmem:[#allocation14 + $0x608] sm:$0xff]  ;;  %v912_v52 = vld [vmem:[#allocation14 + $0x990] sm:$0xff] }
 0x302   :  { %1166 = vmatpush2.msra.mxu0 %v783_v53  ;;  %1277 = vmatprep.subr.mxu1 %v667_v54  ;;  %v793_v53 = vld [vmem:[#allocation14 + $0x5d8] sm:$0xff]  ;;  %v911_v54 = vld [vmem:[#allocation14 + $0x988] sm:$0xff] }
 0x303   :  { %1167 = vmatprep.subr.mxu0 %v777_v55  ;;  %1278 = vmatpush1.msra.mxu1 %v666_v56  ;;  %v792_v55 = vld [vmem:[#allocation14 + $0x5d0] sm:$0xff]  ;;  %v905_v56 = vld [vmem:[#allocation14 + $0x958] sm:$0xff] }
 0x304   :  { %1168 = vmatpush2.msra.mxu0 %v776_v57  ;;  %1279 = vmatprep.subr.mxu1 %v660_v58  ;;  %v786_v57 = vld [vmem:[#allocation14 + $0x5a0] sm:$0xff]  ;;  %v904_v58 = vld [vmem:[#allocation14 + $0x950] sm:$0xff] }
 0x305   :  { %1169 = vmatprep.subr.mxu0 %v770_v59  ;;  %1280 = vmatpush1.msra.mxu1 %v659_v60  ;;  %v785_v59 = vld [vmem:[#allocation14 + $0x598] sm:$0xff]  ;;  %v898_v60 = vld [vmem:[#allocation14 + $0x920] sm:$0xff] }
 0x306   :  { %1170 = vmatpush2.msra.mxu0 %v769_v61  ;;  %1281 = vmatprep.subr.mxu1 %v653_v62  ;;  %v779_v61 = vld [vmem:[#allocation14 + $0x568] sm:$0xff]  ;;  %v897_v62 = vld [vmem:[#allocation14 + $0x918] sm:$0xff] }
 0x307   :  { %1171 = vmatprep.subr.mxu0 %v763_v63  ;;  %1282 = vmatpush1.msra.mxu1 %v652_v1  ;;  %v778_v63 = vld [vmem:[#allocation14 + $0x560] sm:$0xff]  ;;  %v891_v1 = vld [vmem:[#allocation14 + $0x8e8] sm:$0xff] }
 0x308   :  { %1172 = vmatpush2.msra.mxu0 %v762_v3  ;;  %1283 = vmatprep.subr.mxu1 %v646_v4  ;;  %v772_v3 = vld [vmem:[#allocation14 + $0x530] sm:$0xff]  ;;  %v890_v4 = vld [vmem:[#allocation14 + $0x8e0] sm:$0xff] }
 0x309   :  { %1173 = vmatprep.subr.mxu0 %v756_v5  ;;  %1284 = vmatpush1.msra.mxu1 %v645_v6  ;;  %v771_v5 = vld [vmem:[#allocation14 + $0x528] sm:$0xff]  ;;  %v884_v6 = vld [vmem:[#allocation14 + $0x8b0] sm:$0xff] }
 0x30a   :  { %1174 = vmatpush2.msra.mxu0 %v755_v7  ;;  %1285 = vmatprep.subr.mxu1 %v639_v8  ;;  %v765_v7 = vld [vmem:[#allocation14 + $0x4f8] sm:$0xff]  ;;  %v883_v8 = vld [vmem:[#allocation14 + $0x8a8] sm:$0xff] }
 0x30b   :  { %1175 = vmatprep.subr.mxu0 %v749_v9  ;;  %1286 = vmatpush1.msra.mxu1 %v638_v10  ;;  %v764_v9 = vld [vmem:[#allocation14 + $0x4f0] sm:$0xff]  ;;  %v877_v10 = vld [vmem:[#allocation14 + $0x878] sm:$0xff] }
 0x30c   :  { %1176 = vmatpush2.msra.mxu0 %v748_v11  ;;  %1287 = vmatprep.subr.mxu1 %v632_v12  ;;  %v758_v11 = vld [vmem:[#allocation14 + $0x4c0] sm:$0xff]  ;;  %v876_v12 = vld [vmem:[#allocation14 + $0x870] sm:$0xff] }
 0x30d   :  { %1177 = vmatprep.subr.mxu0 %v742_v14  ;;  %1288 = vmatpush1.msra.mxu1 %v631_v18  ;;  %v757_v14 = vld [vmem:[#allocation14 + $0x4b8] sm:$0xff]  ;;  %v870_v18 = vld [vmem:[#allocation14 + $0x840] sm:$0xff] }
 0x30e   :  { %1178 = vmatpush2.msra.mxu0 %v741_v21  ;;  %1289 = vmatprep.subr.mxu1 %v625_v22  ;;  %v751_v21 = vld [vmem:[#allocation14 + $0x488] sm:$0xff]  ;;  %v869_v22 = vld [vmem:[#allocation14 + $0x838] sm:$0xff] }
 0x30f   :  { %1179 = vmatprep.subr.mxu0 %v735_v23  ;;  %1290 = vmatpush1.msra.mxu1 %v624_v24  ;;  %v750_v23 = vld [vmem:[#allocation14 + $0x480] sm:$0xff]  ;;  %v863_v24 = vld [vmem:[#allocation14 + $0x808] sm:$0xff] }
 0x310   :  { %1180 = vmatpush2.msra.mxu0 %v734_v25  ;;  %1291 = vmatprep.subr.mxu1 %v618_v26  ;;  %v744_v25 = vld [vmem:[#allocation14 + $0x450] sm:$0xff]  ;;  %v862_v26 = vld [vmem:[#allocation14 + $0x800] sm:$0xff] }
 0x311   :  { %1181 = vmatprep.subr.mxu0 %v728_v27  ;;  %1292 = vmatpush1.msra.mxu1 %v617_v28  ;;  %v743_v27 = vld [vmem:[#allocation14 + $0x448] sm:$0xff]  ;;  %v856_v28 = vld [vmem:[#allocation14 + $0x7d0] sm:$0xff] }
 0x312   :  { %1182 = vmatpush2.msra.mxu0 %v727_v29  ;;  %1293 = vmatprep.subr.mxu1 %v611_v30  ;;  %v737_v29 = vld [vmem:[#allocation14 + $0x418] sm:$0xff]  ;;  %v855_v30 = vld [vmem:[#allocation14 + $0x7c8] sm:$0xff] }
 0x313   :  { %1183 = vmatprep.subr.mxu0 %v721_v31  ;;  %1294 = vmatpush1.msra.mxu1 %v610_v32  ;;  %v736_v31 = vld [vmem:[#allocation14 + $0x410] sm:$0xff]  ;;  %v849_v32 = vld [vmem:[#allocation14 + $0x798] sm:$0xff] }
 0x314   :  { %1184 = vmatpush2.msra.mxu0 %v720_v33  ;;  %1295 = vmatprep.subr.mxu1 %v828_v34  ;;  %v730_v33 = vld [vmem:[#allocation14 + $0x3e0] sm:$0xff]  ;;  %v848_v34 = vld [vmem:[#allocation14 + $0x790] sm:$0xff] }
 0x315   :  { %1186 = vmatmul.mubr.f32.vlgmr.msra.gmra.mxu0 %v2142_v15  ;;  %1296 = vmatpush2.msra.mxu1 %v827_v35  ;;  %v729_v35 = vld [vmem:[#allocation14 + $0x3d8] sm:$0xff] }
 0x316   :  { %1334 = vmatprep.subr.mxu0 %v940_v36  ;;  %1297 = vmatprep.subr.mxu1 %v821_v37  ;;  %v842_v36 = vld [vmem:[#allocation14 + $0x760] sm:$0xff]  ;;  %v723_v37 = vld [vmem:[#allocation14 + $0x3a8] sm:$0xff] }
 0x317   :  { %1335 = vmatpush1.msra.mxu0 %v939_v38  ;;  %1298 = vmatpush2.msra.mxu1 %v820_v39  ;;  %v841_v38 = vld [vmem:[#allocation14 + $0x758] sm:$0xff]  ;;  %v722_v39 = vld [vmem:[#allocation14 + $0x3a0] sm:$0xff] }
 0x318   :  { %1336 = vmatprep.subr.mxu0 %v933_v40  ;;  %1299 = vmatprep.subr.mxu1 %v814_v41  ;;  %v835_v40 = vld [vmem:[#allocation14 + $0x728] sm:$0xff]  ;;  %v834_v41 = vld [vmem:[#allocation14 + $0x720] sm:$0xff] }
 0x319   :  { %1337 = vmatpush1.msra.mxu0 %v932_v42  ;;  %1300 = vmatpush2.msra.mxu1 %v813_v43  ;;  %v829_v42 = vld [vmem:[#allocation14 + $0x6f8] sm:$0xff] }
 0x31a   :  { %1338 = vmatprep.subr.mxu0 %v926_v44  ;;  %1301 = vmatprep.subr.mxu1 %v807_v45  ;;  %v941_v43 = vld [vmem:[#allocation14 + $0xa78] sm:$0xff]  ;;  %v822_v45 = vld [vmem:[#allocation14 + $0x6c0] sm:$0xff] }
 0x31b   :  { %1339 = vmatpush1.msra.mxu0 %v925_v46  ;;  %1302 = vmatpush2.msra.mxu1 %v806_v47  ;;  %v717_v44 = vld [vmem:[#allocation14 + $0x378] sm:$0xff]  ;;  %v934_v46 = vld [vmem:[#allocation14 + $0xa40] sm:$0xff] }
 0x31c   :  { %1340 = vmatprep.subr.mxu0 %v919_v48  ;;  %1303 = vmatprep.subr.mxu1 %v800_v49  ;;  %v710_v47 = vld [vmem:[#allocation14 + $0x340] sm:$0xff]  ;;  %v815_v48 = vld [vmem:[#allocation14 + $0x688] sm:$0xff] }
 0x31d   :  { %1341 = vmatpush1.msra.mxu0 %v918_v50  ;;  %1304 = vmatpush2.msra.mxu1 %v799_v51  ;;  %v927_v49 = vld [vmem:[#allocation14 + $0xa08] sm:$0xff]  ;;  %v808_v51 = vld [vmem:[#allocation14 + $0x650] sm:$0xff] }
 0x31e   :  { %1342 = vmatprep.subr.mxu0 %v912_v52  ;;  %1305 = vmatprep.subr.mxu1 %v793_v53  ;;  %v703_v50 = vld [vmem:[#allocation14 + $0x308] sm:$0xff]  ;;  %v920_v52 = vld [vmem:[#allocation14 + $0x9d0] sm:$0xff] }
 0x31f   :  { %1343 = vmatpush1.msra.mxu0 %v911_v54  ;;  %1306 = vmatpush2.msra.mxu1 %v792_v55  ;;  %v696_v53 = vld [vmem:[#allocation14 + $0x2d0] sm:$0xff]  ;;  %v801_v54 = vld [vmem:[#allocation14 + $0x618] sm:$0xff] }
 0x320   :  { %1344 = vmatprep.subr.mxu0 %v905_v56  ;;  %1307 = vmatprep.subr.mxu1 %v786_v57  ;;  %v689_v55 = vld [vmem:[#allocation14 + $0x298] sm:$0xff]  ;;  %v794_v56 = vld [vmem:[#allocation14 + $0x5e0] sm:$0xff] }
 0x321   :  { %1345 = vmatpush1.msra.mxu0 %v904_v58  ;;  %1308 = vmatpush2.msra.mxu1 %v785_v59  ;;  %v906_v57 = vld [vmem:[#allocation14 + $0x960] sm:$0xff]  ;;  %v787_v59 = vld [vmem:[#allocation14 + $0x5a8] sm:$0xff] }
 0x322   :  { %1346 = vmatprep.subr.mxu0 %v898_v60  ;;  %1309 = vmatprep.subr.mxu1 %v779_v61  ;;  %v682_v58 = vld [vmem:[#allocation14 + $0x260] sm:$0xff]  ;;  %v899_v60 = vld [vmem:[#allocation14 + $0x928] sm:$0xff] }
 0x323   :  { %1347 = vmatpush1.msra.mxu0 %v897_v62  ;;  %1310 = vmatpush2.msra.mxu1 %v778_v63  ;;  %v675_v61 = vld [vmem:[#allocation14 + $0x228] sm:$0xff]  ;;  %v780_v62 = vld [vmem:[#allocation14 + $0x570] sm:$0xff] }
 0x324   :  { %1348 = vmatprep.subr.mxu0 %v891_v1  ;;  %1311 = vmatprep.subr.mxu1 %v772_v3  ;;  %v892_v63 = vld [vmem:[#allocation14 + $0x8f0] sm:$0xff]  ;;  %v773_v3 = vld [vmem:[#allocation14 + $0x538] sm:$0xff] }
 0x325   :  { %1349 = vmatpush1.msra.mxu0 %v890_v4  ;;  %1312 = vmatpush2.msra.mxu1 %v771_v5  ;;  %v668_v1 = vld [vmem:[#allocation14 + $0x1f0] sm:$0xff]  ;;  %v885_v4 = vld [vmem:[#allocation14 + $0x8b8] sm:$0xff] }
 0x326   :  { %1350 = vmatprep.subr.mxu0 %v884_v6  ;;  %1313 = vmatprep.subr.mxu1 %v765_v7  ;;  %v661_v5 = vld [vmem:[#allocation14 + $0x1b8] sm:$0xff]  ;;  %v766_v6 = vld [vmem:[#allocation14 + $0x500] sm:$0xff] }
 0x327   :  { %1351 = vmatpush1.msra.mxu0 %v883_v8  ;;  %1314 = vmatpush2.msra.mxu1 %v764_v9  ;;  %v878_v7 = vld [vmem:[#allocation14 + $0x880] sm:$0xff]  ;;  %v759_v9 = vld [vmem:[#allocation14 + $0x4c8] sm:$0xff] }
 0x328   :  { %1352 = vmatprep.subr.mxu0 %v877_v10  ;;  %1315 = vmatprep.subr.mxu1 %v758_v11  ;;  %v654_v8 = vld [vmem:[#allocation14 + $0x180] sm:$0xff]  ;;  %v871_v10 = vld [vmem:[#allocation14 + $0x848] sm:$0xff] }
 0x329   :  { %1353 = vmatpush1.msra.mxu0 %v876_v12  ;;  %1316 = vmatpush2.msra.mxu1 %v757_v14  ;;  %v647_v11 = vld [vmem:[#allocation14 + $0x148] sm:$0xff]  ;;  %v752_v12 = vld [vmem:[#allocation14 + $0x490] sm:$0xff] }
 0x32a   :  { %1354 = vmatprep.subr.mxu0 %v870_v18  ;;  %1317 = vmatprep.subr.mxu1 %v751_v21  ;;  %v864_v14 = vld [vmem:[#allocation14 + $0x810] sm:$0xff]  ;;  %v745_v21 = vld [vmem:[#allocation14 + $0x458] sm:$0xff] }
 0x32b   :  { %1355 = vmatpush1.msra.mxu0 %v869_v22  ;;  %1318 = vmatpush2.msra.mxu1 %v750_v23  ;;  %v640_v18 = vld [vmem:[#allocation14 + $0x110] sm:$0xff]  ;;  %v857_v22 = vld [vmem:[#allocation14 + $0x7d8] sm:$0xff] }
 0x32c   :  { %1356 = vmatprep.subr.mxu0 %v863_v24  ;;  %1319 = vmatprep.subr.mxu1 %v744_v25  ;;  %v633_v23 = vld [vmem:[#allocation14 + $0xd8] sm:$0xff]  ;;  %v738_v24 = vld [vmem:[#allocation14 + $0x420] sm:$0xff] }
 0x32d   :  { %1357 = vmatpush1.msra.mxu0 %v862_v26  ;;  %1320 = vmatpush2.msra.mxu1 %v743_v27  ;;  %v850_v25 = vld [vmem:[#allocation14 + $0x7a0] sm:$0xff]  ;;  %v731_v27 = vld [vmem:[#allocation14 + $0x3e8] sm:$0xff] }
 0x32e   :  { %1358 = vmatprep.subr.mxu0 %v856_v28  ;;  %1321 = vmatprep.subr.mxu1 %v737_v29  ;;  %v626_v26 = vld [vmem:[#allocation14 + $0xa0] sm:$0xff]  ;;  %v843_v28 = vld [vmem:[#allocation14 + $0x768] sm:$0xff] }
 0x32f   :  { %1359 = vmatpush1.msra.mxu0 %v855_v30  ;;  %1322 = vmatpush2.msra.mxu1 %v736_v31  ;;  %v619_v29 = vld [vmem:[#allocation14 + $0x68] sm:$0xff]  ;;  %v724_v30 = vld [vmem:[#allocation14 + $0x3b0] sm:$0xff] }
 0x330   :  { %1360 = vmatprep.subr.mxu0 %v849_v32  ;;  %1323 = vmatprep.subr.mxu1 %v730_v33  ;;  %v836_v31 = vld [vmem:[#allocation14 + $0x730] sm:$0xff]  ;;  %v2178_v33 = vld [vmem:[#allocation16] sm:$0xff] }
 0x331   :  { %1361 = vmatpush1.msra.mxu0 %v848_v34  ;;  %1324 = vmatpush2.msra.mxu1 %v729_v35  ;;  %v612_v32 = vld [vmem:[#allocation14 + $0x30] sm:$0xff]  ;;  %v947_v34 = vrot.slane %v2178_v33, %v2127_v17  ;;  %v951_v35 = vrot.slane %v2178_v33, %v2130_v19 }
 0x332   :  { %1362 = vmatprep.subr.mxu0 %v842_v36  ;;  %1325 = vmatprep.subr.mxu1 %v723_v37 }
 0x333   :  { %1363 = vmatpush1.msra.mxu0 %v841_v38  ;;  %1326 = vmatpush2.msra.mxu1 %v722_v39 }
 0x334   :  { %1364 = vmatprep.subr.mxu0 %v835_v40  ;;  %1328 = vmatmul.mubr.f32.vlgmr.msra.gmra.mxu1 %v2142_v15 }
 0x335   :  { %1365 = vmatpush1.msra.mxu0 %v834_v41  ;;  %1398 = vmatprep.mubr.f32.mxu0 %v2037_v0 }
 0x336   :  { %1725 = vmatprep.subr.mxu1 %v2037_v0  ;;  %1399 = vmatmul.mubr.f32.vlgmr.msra.gmra.mxu0 %v2144_v20 }
 0x337   :  { %1662 = vmatprep.subr.mxu0 %v829_v42  ;;  %1726 = vmatpush3.msra.mxu1 %v941_v43 }
 0x338   :  { %1663 = vmatpush3.msra.mxu0 %v717_v44  ;;  %1469 = vmatprep.mubr.f32.mxu0 %v2140_v13  ;;  %v913_v13 = vld [vmem:[#allocation14 + $0x998] sm:$0xff] }
 0x339   :  { %1727 = vmatprep.subr.mxu1 %v2037_v0  ;;  %1664 = vmatprep.subr.mxu0 %v822_v45 }
 0x33a   :  { %1728 = vmatpush3.msra.mxu1 %v934_v46  ;;  %1665 = vmatpush3.msra.mxu0 %v710_v47  ;;  %v958_v47 = vsub.s32 3, %v2124_v16 }
 0x33b   :  { %1729 = vmatprep.subr.mxu1 %v2037_v0  ;;  %1666 = vmatprep.subr.mxu0 %v815_v48  ;;  %v955_v48 = vrot.slane %v2178_v33, %v457_v2  ;;  %v962_v2 = vsub.s32 4, %v2124_v16 }
 0x33c   :  { %1730 = vmatpush3.msra.mxu1 %v927_v49  ;;  %1667 = vmatpush3.msra.mxu0 %v703_v50  ;;  %v959_v49 = vrot.slane %v2178_v33, %v958_v47 }
 0x33d   :  { %1731 = vmatprep.subr.mxu1 %v2037_v0  ;;  %1668 = vmatprep.subr.mxu0 %v808_v51 }
 0x33e   :  { %1732 = vmatpush3.msra.mxu1 %v920_v52  ;;  %1669 = vmatpush3.msra.mxu0 %v696_v53 }
 0x33f   :  { %1733 = vmatprep.subr.mxu1 %v2037_v0  ;;  %1670 = vmatprep.subr.mxu0 %v801_v54 }
 0x340   :  { %1734 = vmatpush3.msra.mxu1 %v913_v13  ;;  %1671 = vmatpush3.msra.mxu0 %v689_v55 }
 0x341   :  { %1735 = vmatprep.subr.mxu1 %v2037_v0  ;;  %1672 = vmatprep.subr.mxu0 %v794_v56 }
 0x342   :  { %1736 = vmatpush3.msra.mxu1 %v906_v57  ;;  %1673 = vmatpush3.msra.mxu0 %v682_v58 }
 0x343   :  { %1737 = vmatprep.subr.mxu1 %v2037_v0  ;;  %1674 = vmatprep.subr.mxu0 %v787_v59 }
 0x344   :  { %1738 = vmatpush3.msra.mxu1 %v899_v60  ;;  %1675 = vmatpush3.msra.mxu0 %v675_v61 }
 0x345   :  { %1739 = vmatprep.subr.mxu1 %v2037_v0  ;;  %1676 = vmatprep.subr.mxu0 %v780_v62 }
 0x346   :  { %1740 = vmatpush3.msra.mxu1 %v892_v63  ;;  %1677 = vmatpush3.msra.mxu0 %v668_v1  ;;  %v966_v63 = vsub.s32 5, %v2124_v16  ;;  %v963_v1 = vrot.slane %v2178_v33, %v962_v2 }
 0x347   :  { %1741 = vmatprep.subr.mxu1 %v2037_v0  ;;  %1678 = vmatprep.subr.mxu0 %v773_v3 }
 0x348   :  { %1742 = vmatpush3.msra.mxu1 %v885_v4  ;;  %1679 = vmatpush3.msra.mxu0 %v661_v5  ;;  %v967_v3 = vrot.slane %v2178_v33, %v966_v63 }
 0x349   :  { %1743 = vmatprep.subr.mxu1 %v2037_v0  ;;  %1680 = vmatprep.subr.mxu0 %v766_v6 }
 0x34a   :  { %1744 = vmatpush3.msra.mxu1 %v878_v7  ;;  %1681 = vmatpush3.msra.mxu0 %v654_v8 }
 0x34b   :  { %1745 = vmatprep.subr.mxu1 %v2037_v0  ;;  %1682 = vmatprep.subr.mxu0 %v759_v9 }
 0x34c   :  { %1746 = vmatpush3.msra.mxu1 %v871_v10  ;;  %1683 = vmatpush3.msra.mxu0 %v647_v11 }
 0x34d   :  { %1747 = vmatprep.subr.mxu1 %v2037_v0  ;;  %1684 = vmatprep.subr.mxu0 %v752_v12 }
 0x34e   :  { %1748 = vmatpush3.msra.mxu1 %v864_v14  ;;  %1685 = vmatpush3.msra.mxu0 %v640_v18 }
 0x34f   :  { %1749 = vmatprep.subr.mxu1 %v2037_v0  ;;  %1686 = vmatprep.subr.mxu0 %v745_v21 }
 0x350   :  { %1750 = vmatpush3.msra.mxu1 %v857_v22  ;;  %1687 = vmatpush3.msra.mxu0 %v633_v23 }
 0x351   :  { %1751 = vmatprep.subr.mxu1 %v2037_v0  ;;  %1688 = vmatprep.subr.mxu0 %v738_v24 }
 0x352   :  { %1752 = vmatpush3.msra.mxu1 %v850_v25  ;;  %1689 = vmatpush3.msra.mxu0 %v626_v26  ;;  %v970_v26 = vsub.s32 6, %v2124_v16 }
 0x353   :  { %1753 = vmatprep.subr.mxu1 %v2037_v0  ;;  %1690 = vmatprep.subr.mxu0 %v731_v27 }
 0x354   :  { %1754 = vmatpush3.msra.mxu1 %v843_v28  ;;  %1691 = vmatpush3.msra.mxu0 %v619_v29 }
 0x355   :  { %1755 = vmatprep.subr.mxu1 %v2037_v0  ;;  %1692 = vmatprep.subr.mxu0 %v724_v30 }
 0x356   :  { %1756 = vmatpush3.msra.mxu1 %v836_v31  ;;  %1757 = vmatprep.mubr.msk.f32.mxu1 %vm2038_vm0, %v2037_v0  ;;  %v971_v31 = vrot.slane %v2178_v33, %v970_v26 }
 0x357   :  { %1693 = vmatpush3.msra.mxu0 %v612_v32  ;;  %1758 = vmatmul.mubr.f32.vlgmr.msra.gmra.mxu1 %v2144_v20 }
 0x358   :  { %1470 = vmatmul.mubr.f32.vlgmr.msra.gmra.mxu0 %v2142_v15 }
 0x392   :  { %v1045_v36 = vpop.f32.mrf.mxu1 }
 0x393   :  { %v1046_v37 = vadd.f32 %v1045_v36, %v947_v34  ;;  %v1116_v38 = vpop.f32.mrf.mxu0 }
 0x394   :  { %v1047_v39 = vpop.f32.mrf.mxu1 }
 0x395   :  { %v1117_v40 = vadd.f32 %v1116_v38, %v1046_v37  ;;  %v1048_v41 = vadd.f32 %v1047_v39, %v951_v35  ;;  %v1118_v0 = vpop.f32.mrf.mxu0 }
 0x397   :  { %v1615_v42 = vmul.f32 -1.442695, %v1117_v40  ;;  %v1119_v43 = vadd.f32 %v1118_v0, %v1048_v41 }
 0x399   :  { %1780 = vpow2.f32 %v1615_v42  ;;  %v1616_v20 = vmul.f32 -1.442695, %v1119_v43 }
 0x39b   :  { %1782 = vpow2.f32 %v1616_v20 }
 0x3a6   :  { %v1781_v15 = vpop.eup %1780 }
 0x3a7   :  { %v1566_v44 = vadd.f32 1.0, %v1781_v15 }
 0x3a8   :  { %v1783_v45 = vpop.eup %1782 }
 0x3a9   :  { %1784 = vrcp.f32 %v1566_v44  ;;  %v1567_v17 = vadd.f32 1.0, %v1783_v45 }
 0x3ab   :  { %1786 = vrcp.f32 %v1567_v17 }
 0x3b3   :  { %v1258_v50 = vpop.f32.mrf.mxu1 }
 0x3b5   :  { %v1260_v55 = vpop.f32.mrf.mxu1 }
 0x3b6   :  { %v1785_v46 = vpop.eup %1784 }
 0x3b7   :  { %1587 = vst [vmem:[#allocation17] sm:$0xff] %v1785_v46 }
 0x3b8   :  { %v1787_v19 = vpop.eup %1786 }
 0x3b9   :  { %1588 = vst [vmem:[#allocation17 + $0x8] sm:$0xff] %v1787_v19 }
 0x3d5   :  { %v1187_v51 = vpop.f32.mrf.mxu0 }
 0x3d6   :  { %v1188_v52 = vadd.f32 %v1187_v51, %v955_v48 }
 0x3d7   :  { %v1189_v53 = vpop.f32.mrf.mxu0 }
 0x3d8   :  { %v1259_v54 = vadd.f32 %v1258_v50, %v1188_v52  ;;  %v1190_v13 = vadd.f32 %v1189_v53, %v959_v49 }
 0x3da   :  { %v1617_v56 = vmul.f32 -1.442695, %v1259_v54  ;;  %v1261_v57 = vadd.f32 %v1260_v55, %v1190_v13 }
 0x3dc   :  { %1788 = vpow2.f32 %v1617_v56  ;;  %v1618_v58 = vmul.f32 -1.442695, %v1261_v57 }
 0x3de   :  { %1790 = vpow2.f32 %v1618_v58 }
 0x3e9   :  { %v1789_v59 = vpop.eup %1788 }
 0x3ea   :  { %v1568_v60 = vadd.f32 1.0, %v1789_v59 }
 0x3eb   :  { %v1791_v61 = vpop.eup %1790 }
 0x3ec   :  { %1792 = vrcp.f32 %v1568_v60  ;;  %v1569_v62 = vadd.f32 1.0, %v1791_v61 }
 0x3ee   :  { %1794 = vrcp.f32 %v1569_v62 }
 0x3f4   :  { %v1329_v4 = vpop.f32.mrf.mxu1 }
 0x3f5   :  { %v1330_v5 = vadd.f32 %v1329_v4, %v963_v1 }
 0x3f6   :  { %v1400_v6 = vpop.f32.mrf.mxu0  ;;  %v1331_v7 = vpop.f32.mrf.mxu1 }
 0x3f7   :  { %v1401_v8 = vadd.f32 %v1400_v6, %v1330_v5  ;;  %v1332_v9 = vadd.f32 %v1331_v7, %v967_v3 }
 0x3f8   :  { %v1402_v10 = vpop.f32.mrf.mxu0 }
 0x3f9   :  { %v1793_v11 = vpop.eup %1792  ;;  %v1619_v12 = vmul.f32 -1.442695, %v1401_v8  ;;  %v1403_v14 = vadd.f32 %v1402_v10, %v1332_v9 }
 0x3fa   :  { %1589 = vst [vmem:[#allocation17 + $0x10] sm:$0xff] %v1793_v11 }
 0x3fb   :  { %v1795_v18 = vpop.eup %1794  ;;  %1796 = vpow2.f32 %v1619_v12  ;;  %v1620_v21 = vmul.f32 -1.442695, %v1403_v14 }
 0x3fc   :  { %1590 = vst [vmem:[#allocation17 + $0x18] sm:$0xff] %v1795_v18 }
 0x3fd   :  { %1798 = vpow2.f32 %v1620_v21 }
 0x408   :  { %v1797_v22 = vpop.eup %1796 }
 0x409   :  { %v1570_v23 = vadd.f32 1.0, %v1797_v22 }
 0x40a   :  { %v1799_v24 = vpop.eup %1798 }
 0x40b   :  { %1800 = vrcp.f32 %v1570_v23  ;;  %v1571_v25 = vadd.f32 1.0, %v1799_v24 }
 0x40d   :  { %1802 = vrcp.f32 %v1571_v25 }
 0x417   :  { %v1541_v27 = vpop.f32.mrf.mxu1 }
 0x418   :  { %v1801_v28 = vpop.eup %1800  ;;  %v1694_v29 = vpop.f32.mrf.mxu0 }
 0x419   :  { %1591 = vst [vmem:[#allocation17 + $0x20] sm:$0xff] %v1801_v28  ;;  %v1759_v30 = vpop.f32.mrf.mxu1 }
 0x41a   :  { %v1803_v32 = vpop.eup %1802  ;;  %v1695_v34 = vpop.f32.mrf.mxu0 }
 0x41b   :  { %1592 = vst [vmem:[#allocation17 + $0x28] sm:$0xff] %v1803_v32  ;;  %v1696_v35 = vadd.f32 %v1695_v34, %v1694_v29 }
 0x41d   :  { %v1472_v36 = vadd.f32 %v1696_v35, %v971_v31 }
 0x41f   :  { %v1542_v37 = vadd.f32 %v1541_v27, %v1472_v36 }
 0x421   :  { %v1621_v38 = vmul.f32 -1.442695, %v1542_v37 }
 0x423   :  { %1804 = vpow2.f32 %v1621_v38 }
 0x430   :  { %v1805_v39 = vpop.eup %1804 }
 0x431   :  { %v1572_v40 = vadd.f32 1.0, %v1805_v39 }
 0x433   :  { %1806 = vrcp.f32 %v1572_v40 }
 0x440   :  { %v1807_v16 = vpop.eup %1806 }
 0x441   :  { %1593 = vst [vmem:[#allocation17 + $0x30] sm:$0xff] %v1807_v16 }
 0x442   :  { %1999 = shalt.err (!%p1996_p7)
}
 0x443   :  { %1603 = dma.vmem_to_hbm [thread:$0]  %s1601_s8, 896, %s2207_s9, [#allocation4]  }
 0x444   :  { %2018 = dma.done.wait [#allocation4], 896  }
 0x445   :  { %2019 = vsyncadd [#allocation4], 4294966400 }
 0x446   :  { %1607 = vsyncpa [#allocation3], 1 }
 0x447   :  { %1608 = vsyncpa [#allocation6], 1 }
 0x448   :  { %1609 = vsyncpa [#allocation9], 1 }
 0x449   :  { %1610 = vsyncpa [#allocation12], 1 }
 0x44a   :  { %1611 = vsyncpa [#allocation15], 1 }
 0x44b   :  { %1612 = vsyncpa [#allocation4], 1 }

</bundles_post_ra>
